<compile_context>
chip_gen: v5e
topology: v5e:2x2
jax: 0.10.0
libtpu: 0.0.40
codegen_flags: <defaults>
</compile_context>

<pallas_src>
import jax
import jax.numpy as jnp
from jax import lax
from jax.experimental import pallas as pl
from jax.experimental.pallas import tpu as pltpu

IN_FEATURES = 2048
EPS = 1e-12                 # F.normalize default eps
_MAX_RESIDENT_F = 2048      # widest W^T kept fully VMEM resident (bf16, 2 bufs -> 16 MiB)


def _cdiv(a, b):
    return -(-a // b)


def _round_up(n, m):
    return _cdiv(n, m) * m


# ---------------------------------------------------------------------------
# Parameter prep (one time, outside the per-call hot path)
# ---------------------------------------------------------------------------
def prepare_params(weight, bias, compute_dtype=jnp.bfloat16):
    """weight: (feature_num, 2048) as stored by nn.Linear; bias: (feature_num,).

    Returns (wt, b): wt (2048, F_pad) in compute_dtype, b (F_pad,) f32, where
    F_pad = round_up(feature_num, 128) so kernel stores are lane-dense.
    compute_dtype=jnp.bfloat16 is the MXU-native choice; pass jnp.float32 for
    bit-closer parity with the f32 PyTorch module (slower).
    """
    f_out, k = weight.shape
    assert k == IN_FEATURES
    f_pad = _round_up(max(f_out, 128), 128)
    wt = weight.T.astype(compute_dtype)
    b = bias.astype(jnp.float32)
    if f_pad != f_out:
        wt = jnp.pad(wt, ((0, 0), (0, f_pad - f_out)))   # zero cols -> 0 in ss
        b = jnp.pad(b, (0, f_pad - f_out))
    return wt, b


# ---------------------------------------------------------------------------
# Kernel bodies
# ---------------------------------------------------------------------------
def _build_kernel(n_j, tn, tm):
    """Returns (kernel, scratch_shapes) for an (i, j) grid with n_j feature steps."""
    if n_j == 1:
        # Whole W^T resident: single-pass fused matmul + bias + L2 normalize.
        def kernel(x_ref, wt_ref, b_ref, o_ref):
            x = x_ref[...].astype(wt_ref.dtype)            # in-kernel cast (bf16)
            y = jnp.dot(x, wt_ref[...], preferred_element_type=jnp.float32)
            y = y + b_ref[...]
            ss = jnp.sum(y * y, axis=-1, keepdims=True)
            inv = lax.rsqrt(jnp.maximum(ss, EPS * EPS))    # EUP, effectively free
            o_ref[...] = (y * inv).astype(o_ref.dtype)

        return kernel, []

    # Large feature_num: stream W^T in tn-wide tiles along grid axis j, keep the
    # output row block resident across j, accumulate sum-of-squares in scratch,
    # and scale the whole resident block on the last feature step.
    def kernel(x_ref, wt_ref, b_ref, o_ref, ss_ref):
        j = pl.program_id(1)

        @pl.when(j == 0)
        def _():
            ss_ref[...] = jnp.zeros_like(ss_ref)

        x = x_ref[...].astype(wt_ref.dtype)
        y = jnp.dot(x, wt_ref[...], preferred_element_type=jnp.float32)
        y = y + b_ref[...]
        ss_ref[...] += jnp.sum(y * y, axis=-1, keepdims=True)

        col0 = pl.multiple_of(j * tn, tn)                  # tn % 128 == 0 -> aligned
        o_ref[:, pl.ds(col0, tn)] = y.astype(o_ref.dtype)

        @pl.when(j == pl.num_programs(1) - 1)
        def _():
            inv = lax.rsqrt(jnp.maximum(ss_ref[...], EPS * EPS))
            o_ref[...] = (o_ref[...].astype(jnp.float32) * inv).astype(o_ref.dtype)

    return kernel, [pltpu.VMEM((tm, 1), jnp.float32)]


# ---------------------------------------------------------------------------
# Tiling / VMEM sizing
# ---------------------------------------------------------------------------
def _choose_tm(batch, tm_max=512):
    """Large row tile for HBM efficiency; >=2 grid rows so both v7x TCs get
    work; sized to the batch so the masked tail is minimal (no padded waste)."""
    if batch <= 8:
        return 8
    rows = max(_cdiv(batch, tm_max), 2)
    return _round_up(_cdiv(batch, rows), 8)


def _choose_tn(f_pad):
    """Feature tile: whole W^T resident when small, else a divisor of F_pad so
    no garbage columns ever enter the sum-of-squares."""
    if f_pad <= _MAX_RESIDENT_F:
        return f_pad
    for tn in (1024, 512, 256, 128):
        if f_pad % tn == 0:
            return tn
    return 128  # unreachable: f_pad is always a multiple of 128


def _vmem_limit_bytes(tm, tn, f_pad, x_itemsize, out_itemsize, n_j):
    """Real tile footprint (double buffers) + slack, clamped to 0.9x capacity."""
    need = (2 * tm * IN_FEATURES * x_itemsize          # x tiles
            + 2 * IN_FEATURES * tn * 2                 # bf16 W^T tiles
            + 2 * 8 * tn * 4                           # bias (sublane padded)
            + 2 * tm * f_pad * out_itemsize            # resident out block
            + (tm * 128 * 4 if n_j > 1 else 0)         # ss scratch (lane padded)
            + 4 * 1024 * 1024)                         # Mosaic internal slack
    try:
        cap = int(pltpu.get_tpu_info().vmem_capacity_bytes)
    except Exception:
        cap = 64 * 1024 * 1024                         # v7x per-TC lower bound
    return int(min(max(need, 32 * 1024 * 1024), int(0.9 * cap)))


# ---------------------------------------------------------------------------
# Forward wrapper
# ---------------------------------------------------------------------------
def linear_normalize(x, wt, bias, *, feature_num=None, tm_max=512,
                     out_dtype=jnp.float32):
    """x: (B, 2048) float; wt/bias from prepare_params. Returns F.normalize(x @ W^T + b)."""
    B, K = x.shape
    K2, F_pad = wt.shape
    assert K == IN_FEATURES and K2 == IN_FEATURES
    assert F_pad % 128 == 0, "run prepare_params() first (lane-dense features)"
    assert bias.shape == (F_pad,)

    tm = _choose_tm(B, tm_max)
    tn = _choose_tn(F_pad)
    n_j = F_pad // tn
    grid = (_cdiv(B, tm), n_j)            # cdiv grid: partial last row block is masked

    kernel, scratch = _build_kernel(n_j, tn, tm)
    b2 = bias.reshape(1, F_pad).astype(jnp.float32)

    out = pl.pallas_call(
        kernel,
        out_shape=jax.ShapeDtypeStruct((B, F_pad), out_dtype),
        grid_spec=pltpu.PrefetchScalarGridSpec(
            num_scalar_prefetch=0,
            grid=grid,
            in_specs=[
                pl.BlockSpec((tm, K), lambda i, j: (i, 0)),   # x rows (cast in kernel)
                pl.BlockSpec((K, tn), lambda i, j: (0, j)),   # W^T resident / streamed
                pl.BlockSpec((1, tn), lambda i, j: (0, j)),   # bias
            ],
            out_specs=pl.BlockSpec((tm, F_pad), lambda i, j: (i, 0)),
            scratch_shapes=scratch,
        ),
        compiler_params=pltpu.CompilerParams(
            dimension_semantics=("parallel", "arbitrary"),    # rows shard across TCs
            vmem_limit_bytes=_vmem_limit_bytes(
                tm, tn, F_pad, x.dtype.itemsize,
                jnp.dtype(out_dtype).itemsize, n_j),
        ),
    )(x, wt, b2)

    if feature_num is not None and feature_num != F_pad:
        # Only when feature_num % 128 != 0: trade one slicing pass for
        # lane-dense (unmasked) stores inside the kernel.
        out = out[:, :feature_num]
    return out


def reference(x, weight, bias):
    """Pure-JAX f32 reference matching PyTorch F.normalize(nn.Linear(x))."""
    y = x @ weight.T + bias
    norm = jnp.sqrt(jnp.sum(y * y, axis=-1, keepdims=True))
    return y / jnp.maximum(norm, EPS)


# ---------------------------------------------------------------------------
# Demo / self-test
# ---------------------------------------------------------------------------
if __name__ == "__main__":
    def run_case(key, batch, feature_num):
        kx, kw, kb = jax.random.split(key, 3)
        bound = 1.0 / (IN_FEATURES ** 0.5)
        weight = jax.random.uniform(kw, (feature_num, IN_FEATURES),
                                    minval=-bound, maxval=bound, dtype=jnp.float32)
        bias = jax.random.uniform(kb, (feature_num,),
                                  minval=-bound, maxval=bound, dtype=jnp.float32)
        x = jax.random.normal(kx, (batch, IN_FEATURES), dtype=jnp.float32)

        wt, b = prepare_params(weight, bias)          # transpose + bf16 cast, once
        out = jax.block_until_ready(
            linear_normalize(x, wt, b, feature_num=feature_num))

        ref = reference(x, weight, bias)
        assert out.shape == (batch, feature_num)
        # bf16 matmul inputs (f32 accumulation) -> loose tolerance vs f32 reference
        assert jnp.allclose(out, ref, atol=2e-2, rtol=2e-2), "mismatch vs reference"
        # normalization is done in f32, so unit norm is tight
        assert jnp.allclose(jnp.linalg.norm(out, axis=-1), 1.0, atol=1e-4)

    key = jax.random.PRNGKey(0)
    k1, k2 = jax.random.split(key)
    run_case(k1, batch=300, feature_num=128)  # ragged batch -> 2-step row grid, masked tail
    run_case(k2, batch=37, feature_num=192)   # tiny batch + non-128-multiple feature_num

    print("KERNEL_OK")
</pallas_src>

<mosaic_0001>
module attributes {stable_mosaic.version = 11 : i64} {
  func.func @kernel(%arg0: i32, %arg1: i32, %arg2: memref<152x2048xf32, #tpu.memory_space<vmem>>, %arg3: memref<2048x128xbf16, #tpu.memory_space<vmem>>, %arg4: memref<1x128xf32, #tpu.memory_space<vmem>>, %arg5: memref<152x128xf32, #tpu.memory_space<vmem>>) attributes {dimension_semantics = [#tpu.dimension_semantics<parallel>, #tpu.dimension_semantics<arbitrary>], iteration_bounds = array<i64: 2, 1>, scalar_prefetch = 0 : i64, scratch_operands = 0 : i64, tpu.core_type = #tpu.core_type<tc>, window_params = [{transform_indices = @transform_0, window_bounds = array<i64: 152, 2048>}, {transform_indices = @transform_1, window_bounds = array<i64: 2048, 128>}, {transform_indices = @transform_2, window_bounds = array<i64: 1, 128>}, {transform_indices = @transform_3, window_bounds = array<i64: 152, 128>}]} {
    %c0 = arith.constant 0 : index
    %c0_0 = arith.constant 0 : index
    %0 = vector.load %arg2[%c0, %c0_0] : memref<152x2048xf32, #tpu.memory_space<vmem>>, vector<152x2048xf32>
    %1 = arith.truncf %0 : vector<152x2048xf32> to vector<152x2048xbf16>
    %c0_1 = arith.constant 0 : index
    %c0_2 = arith.constant 0 : index
    %2 = vector.load %arg3[%c0_1, %c0_2] : memref<2048x128xbf16, #tpu.memory_space<vmem>>, vector<2048x128xbf16>
    %cst = arith.constant dense<0.000000e+00> : vector<152x128xf32>
    %3 = tpu.matmul %1, %2, %cst {dimension_numbers = #tpu.dot_dimension_numbers<[1], [0], [0], [1], [0, 0, 1, 1], [], []>} : vector<152x2048xbf16>, vector<2048x128xbf16>, vector<152x128xf32> -> vector<152x128xf32>
    %c0_3 = arith.constant 0 : index
    %c0_4 = arith.constant 0 : index
    %4 = vector.load %arg4[%c0_3, %c0_4] : memref<1x128xf32, #tpu.memory_space<vmem>>, vector<1x128xf32>
    %5 = vector.broadcast %4 : vector<1x128xf32> to vector<152x128xf32>
    %6 = arith.addf %3, %5 : vector<152x128xf32>
    %7 = arith.mulf %6, %6 : vector<152x128xf32>
    %cst_5 = arith.constant dense<0.000000e+00> : vector<152xf32>
    %8 = vector.multi_reduction <add>, %7, %cst_5 [1] : vector<152x128xf32> to vector<152xf32>
    %9 = vector.shape_cast %8 : vector<152xf32> to vector<152x1xf32>
    %cst_6 = arith.constant 1.000000e-24 : f32
    %10 = vector.broadcast %cst_6 : f32 to vector<152x1xf32>
    %11 = arith.maximumf %9, %10 : vector<152x1xf32>
    %12 = math.rsqrt %11 : vector<152x1xf32>
    %13 = vector.broadcast %12 : vector<152x1xf32> to vector<152x128xf32>
    %14 = arith.mulf %6, %13 : vector<152x128xf32>
    %c0_7 = arith.constant 0 : index
    %c0_8 = arith.constant 0 : index
    %15 = vector.load %arg5[%c0_7, %c0_8] : memref<152x128xf32, #tpu.memory_space<vmem>>, vector<152x128xf32>
    tpu.vector_store %arg5[%c0_7, %c0_8], %14 {strides = array<i32>} : memref<152x128xf32, #tpu.memory_space<vmem>>, vector<152x128xf32>,
    return
  }
  func.func @transform_0(%arg0: i32, %arg1: i32) -> (i32, i32) {
    %c0_i32 = arith.constant 0 : i32
    %c0_i32_0 = arith.constant 0 : i32
    return %arg0, %c0_i32 : i32, i32
  }
  func.func @transform_1(%arg0: i32, %arg1: i32) -> (i32, i32) {
    %c0_i32 = arith.constant 0 : i32
    %c0_i32_0 = arith.constant 0 : i32
    return %c0_i32, %arg1 : i32, i32
  }
  func.func @transform_2(%arg0: i32, %arg1: i32) -> (i32, i32) {
    %c0_i32 = arith.constant 0 : i32
    %c0_i32_0 = arith.constant 0 : i32
    return %c0_i32, %arg1 : i32, i32
  }
  func.func @transform_3(%arg0: i32, %arg1: i32) -> (i32, i32) {
    %c0_i32 = arith.constant 0 : i32
    %c0_i32_0 = arith.constant 0 : i32
    return %arg0, %c0_i32 : i32, i32
  }
}

</mosaic_0001>

<bundles_post_ra>
// kernel: tpu_custom_call.1
= control target key start
LH: loop header
LB: loop body
LE: loop exit
PB: predicated region body
PF: predicated region fallthrough
CT: control target
= control target key end

     0   :  { %8 = vsyncpa [#allocation3], 0  ;;  %s4850_s0 = inlined_call_operand.hbm [shape: f32[300,2048], index: 0, kind: input, shape index: {}]   ;;  %s4851_s1 = inlined_call_operand.hbm [shape: bf16[2048,128], index: 1, kind: input, shape index: {}]   ;;  %s4852_s2 = inlined_call_operand.hbm [shape: f32[1,128], index: 2, kind: input, shape index: {}]   ;;  %s4853_s3 = inlined_call_operand.hbm [shape: f32[300,128], index: 3, kind: output, shape index: {}]  }
   0x1   :  { %10 = vsyncpa [#allocation3 + $0x1], 0 }
   0x2   :  { %11 = vsyncpa [#allocation6], 0 }
   0x3   :  { %12 = vsyncpa [#allocation4], 0 }
   0x4   :  { %14 = vsyncpa [#allocation4 + $0x1], 0  ;;  %s4088_s12 = smov 0   ;;  %s4090_s13 = smov 0  }
   0x5   :  { %s4092_s14 = smov 0   ;;  %s4094_s15 = smov 0  }
   0x6   :  { %s4096_s16 = smov 0   ;;  %s4098_s17 = smov 0  }
   0x7 LB: > { %s3093_s18 = sadd.s32 4294967295, %s4058_s17   ;;  %s3094_s19 = sadd.s32 4294967294, %s4058_s17   ;;  %s4058_s17 = sphi %s4098_s17, %s20_s17   ;;  %s4054_s16 = sphi %s4096_s16, %s4864_s16   ;;  %s4050_s15 = sphi %s4094_s15, %s4863_s15   ;;  %s4046_s14 = sphi %s4092_s14, %s4862_s14   ;;  %s4042_s13 = sphi %s4090_s13, %s4861_s13   ;;  %s4038_s12 = sphi %s4088_s12, %s4860_s12  }
   0x8   : > { %p52_p0 = scmp.ne.s32.totalorder %s4042_s13, %s4038_s12  ;;  %p4122_p1 = scmp.eq.s32.totalorder %s3093_s18, 0 }
   0x9   : > { %p4126_p2 = scmp.eq.s32.totalorder %s3093_s18, 1  ;;  %p134_p3 = scmp.eq.s32.totalorder %s3094_s19, 1 }
   0xa   : > { %p4132_p4 = por %p4122_p1, %p52_p0  ;;  %p3095_p5 = scmp.ge.s32.totalorder %s4058_s17, 1 }
   0xb   : > { %p4137_p6 = por %p134_p3, %p52_p0  ;;  %p141_p7 = scmp.lt.s32.totalorder %s4058_s17, 3 }
   0xc   : > { %s154_s26 = sshll.u32 %s4851_s1, 4  ;;  %s4060_s28 = smov [#allocation5]   ;;  %s155_s26 = int_to_ptr.hbm [resolvable:$true] %s154_s26 }
   0xd   : > { %p4145_p8 = pnand %p3095_p5, %p141_p7  ;;  %s156_s29 = sshll.u32 %s4060_s28, 4  ;;  %s157_s29 = int_to_ptr.vmem [resolvable:$true] %s156_s29 }
   0xe   : > { %p3098_p11 = scmp.ge.s32.totalorder %s4058_s17, 2  ;;  %s170_s5 = sshll.u32 %s4852_s2, 4  ;;  %s171_s5 = int_to_ptr.hbm [resolvable:$true] %s170_s5 }
   0xf   : > { %p3766_p9 = pneg %p4145_p8  ;;  %s4061_s6 = smov 64  }
  0x10   : > { %s4062_s7 = smov 4   ;;  %s4063_s8 = smov [#allocation7]  }
  0x11   : > { %p3767_p10 = pnand %p3766_p9, %p4122_p1  ;;  %s172_s9 = sshll.u32 %s4063_s8, 4  ;;  %s173_s9 = int_to_ptr.vmem [resolvable:$true] %s172_s9 }
  0x12   : > { %s32_s10 = sadd.s32 1, %s4054_s16  ;;  %s39_s11 = sadd.s32 1, %s4046_s14 }
  0x13   : > { %3769 = dma.hbm_to_vmem [thread:$0]  (!%p3767_p10), %s155_s26, 16384, %s157_s29, [#allocation6], %s4061_s6, %s4061_s6, %s4062_s7  }
  0x14   : > { %3772 = dma.hbm_to_vmem [thread:$0]  (!%p3767_p10), %s171_s5, 16, %s173_s9, [#allocation6]  }
  0x15   : > { %p34_p12 = scmp.ge.s32.totalorder %s32_s10, 2  ;;  %p46_p13 = scmp.ne.s32.totalorder %s4046_s14, %s4042_s13 }
  0x16   : > { %p47_p0 = scmp.eq.s32.totalorder %s4058_s17, 0  ;;  %p3783_p3 = scmp.lt.s32.totalorder %s4058_s17, 2 }
  0x17   : > { %s4866_s10 = smov (%p34_p12, %s32_s10), 0  ;;  %p4167_p7 = por %p4126_p2, %p46_p13 }
  0x18   : > { %p48_p5 = por %p47_p0, %p46_p13  ;;  %s36_s19 = ssub.s32 %s4054_s16, %s4866_s10 }
  0x19   : > { %s183_s24 = sand.u32 1, %s4046_s14   ;;  %p37_p9 = scmp.eq.s32.totalorder %s36_s19, 0 }
  0x1a   : > { %s3751_s25 = smul.u32 2432, %s183_s24  ;;  %p3774_p10 = pnand %p3783_p3, %p48_p5 }
  0x1b   : > { %s4175_s26 = scalar_select %p37_p9, %s4046_s14, %s39_s11  }
  0x1c   : > { %s3750_s28 = smul.u32 2432, %s4054_s16  ;;  %s187_s29 = scalar_lea.vmem [#allocation2], %s3751_s25 }
  0x1d   : > { %s196_s30 = sshll.u32 %s187_s29, 4  ;;  %s184_s7 = scalar_lea.sflag [#allocation3], %s183_s24  ;;  %s197_s30 = int_to_ptr.vmem [resolvable:$true] %s196_s30 }
  0x1e   : > { %s193_s6 = scalar_lea.hbm %s4850_s0, %s3750_s28  ;;  %s4064_s8 = smov 2048  }
  0x1f   : > { %s194_s21 = sshll.u32 %s193_s6, 4  ;;  %s4065_s9 = smov 128   ;;  %s195_s21 = int_to_ptr.hbm [resolvable:$true] %s194_s21 }
  0x20   : > { %3776 = dma.hbm_to_vmem [thread:$0]  (!%p3774_p10), %s195_s21, 38912, %s197_s30, %s184_s7, %s4064_s8, %s4064_s8, %s4065_s9  }
  0x21   : > { %208 = sbr.rel (%p4145_p8) target bundleno = 979 (0x3d3), region = 32  ;;  %s4184_s11 = sand.u32 (!%p4145_p8), 1, %s4042_s13  }
  0x22   : > { %s3752_s19 = smul.u32 (!%p4145_p8), 2432, %s4184_s11  ;;  %s211_s25 = scalar_lea.sflag (!%p4145_p8), [#allocation3], %s4184_s11 }
  0x24   : > { %s4188_s29 = scalar_lea.vmem (!%p4145_p8), [#allocation2], %s3752_s19 }
  0x26   : > { %4025 = dma.done.wait (%p4132_p4), %s211_s25, 38912  }
  0x27   : > { %4027 = vsyncadd (%p4132_p4), %s211_s25, 4294928384 }
  0x28   : > { %4029 = dma.done.wait (%p4122_p1), [#allocation6], 16400  }
  0x29   : > { %4031 = vsyncadd (%p4122_p1), [#allocation6], 4294950896  ;;  %v3628_v0 = vld [vmem:[#allocation5 + $0x38] sm:$0xff]  ;;  %v3627_v4 = vld [vmem:[#allocation5 + $0x30] sm:$0xff]  ;;  %s3753_s20 = smul.u32 152, %s4184_s11  ;;  %s3992_s9 = scalar_lea.hbm %s4853_s3, 304 }
  0x2a   : > { %v3636_v1 = vld [vmem:[#allocation5 + $0x78] sm:$0xff]  ;;  %1742 = vmatpush.bf16.msra.mxu0 %v3628_v0  ;;  %v3635_v5 = vld [vmem:[#allocation5 + $0x70] sm:$0xff]  ;;  %v3626_v8 = vld [vmem:[#allocation5 + $0x28] sm:$0xff]  ;;  %s3749_s27 = smul.u32 152, %s4050_s15  ;;  %s2975_s15 = scalar_lea.sflag [#allocation4], %s4184_s11 }
  0x2b   : > { %v3644_v2 = vld [vmem:[#allocation5 + $0xb8] sm:$0xff]  ;;  %1800 = vmatpush.bf16.msra.mxu1 %v3636_v1  ;;  %v3643_v6 = vld [vmem:[#allocation5 + $0xb0] sm:$0xff]  ;;  %v3634_v9 = vld [vmem:[#allocation5 + $0x68] sm:$0xff]  ;;  %s4768_s22 = scalar_lea.vmem [#allocation8], %s3753_s20 }
  0x2c   : > { %v3652_v3 = vld [vmem:[#allocation5 + $0xf8] sm:$0xff]  ;;  %1858 = vmatpush.bf16.msra.mxu2 %v3644_v2  ;;  %v3651_v7 = vld [vmem:[#allocation5 + $0xf0] sm:$0xff]  ;;  %v3642_v10 = vld [vmem:[#allocation5 + $0xa8] sm:$0xff]  ;;  %s2986_s30 = scalar_lea.hbm %s4853_s3, %s3749_s27  ;;  %s2987_s4 = sshll.u32 %s4768_s22, 4  ;;  %s2988_s4 = int_to_ptr.vmem [resolvable:$true] %s2987_s4 }
  0x2d   : > { %1916 = vmatpush.bf16.msra.mxu3 %v3652_v3  ;;  %v3650_v11 = vld [vmem:[#allocation5 + $0xe8] sm:$0xff]  ;;  %v3625_v12 = vld [vmem:[#allocation5 + $0x20] sm:$0xff]  ;;  %v3624_v16 = vld [vmem:[#allocation5 + $0x18] sm:$0xff]  ;;  %s2989_s5 = sshll.u32 %s2986_s30, 4  ;;  %s2990_s5 = int_to_ptr.hbm [resolvable:$true] %s2989_s5 }
  0x2e   : > { %1743 = vmatpush.bf16.msra.mxu0 %v3627_v4  ;;  %v3633_v13 = vld [vmem:[#allocation5 + $0x60] sm:$0xff]  ;;  %v3632_v17 = vld [vmem:[#allocation5 + $0x58] sm:$0xff]  ;;  %v3623_v20 = vld [vmem:[#allocation5 + $0x10] sm:$0xff]  ;;  %s3986_s6 = sshra.s32 %s2990_s5, 4  ;;  %s3987_s6 = int_to_ptr.hbm [resolvable:$true] %s3986_s6 }
  0x2f   : > { %1801 = vmatpush.bf16.msra.mxu1 %v3635_v5  ;;  %v3641_v14 = vld [vmem:[#allocation5 + $0xa0] sm:$0xff]  ;;  %v3640_v18 = vld [vmem:[#allocation5 + $0x98] sm:$0xff]  ;;  %v3631_v21 = vld [vmem:[#allocation5 + $0x50] sm:$0xff]  ;;  %s3988_s21 = scalar_lea.hbm %s3987_s6, 152  ;;  %p3993_p8 = scmp.lt.s32.totalorder %s3987_s6, %s4853_s3 }
  0x30   : > { %1859 = vmatpush.bf16.msra.mxu2 %v3643_v6  ;;  %v3649_v15 = vld [vmem:[#allocation5 + $0xe0] sm:$0xff]  ;;  %v3648_v19 = vld [vmem:[#allocation5 + $0xd8] sm:$0xff]  ;;  %v3639_v22 = vld [vmem:[#allocation5 + $0x90] sm:$0xff]  ;;  %p3989_p1 = scmp.ne.s32.totalorder %s3987_s6, %s3988_s21  ;;  %p3994_p12 = scmp.lt.s32.totalorder %s3992_s9, %s3988_s21 }
  0x31   : > { %1917 = vmatpush.bf16.msra.mxu3 %v3651_v7  ;;  %v3647_v23 = vld [vmem:[#allocation5 + $0xd0] sm:$0xff]  ;;  %v3622_v24 = vld [vmem:[#allocation5 + $0x8] sm:$0xff]  ;;  %v3621_v28 = vld [vmem:[#allocation5] sm:$0xff] }
  0x32   : > { %1744 = vmatpush.bf16.msra.mxu0 %v3626_v8  ;;  %v3630_v25 = vld [vmem:[#allocation5 + $0x48] sm:$0xff]  ;;  %v3629_v29 = vld [vmem:[#allocation5 + $0x40] sm:$0xff]  ;;  %v252_v36 = vld [vmem:[%s4188_s29 + $0x10] sm:$0xff]  ;;  %p3990_p2 = pnand %p3989_p1, %p4167_p7  ;;  %p3995_p13 = por %p3994_p12, %p3993_p8 }
  0x33   : > { %1802 = vmatpush.bf16.msra.mxu1 %v3634_v9  ;;  %v3638_v26 = vld [vmem:[#allocation5 + $0x88] sm:$0xff]  ;;  %v3637_v30 = vld [vmem:[#allocation5 + $0x80] sm:$0xff]  ;;  %v268_v37 = vld [vmem:[%s4188_s29 + $0x90] sm:$0xff] }
  0x34   : > { %1860 = vmatpush.bf16.msra.mxu2 %v3642_v10  ;;  %v3646_v27 = vld [vmem:[#allocation5 + $0xc8] sm:$0xff]  ;;  %v3645_v31 = vld [vmem:[#allocation5 + $0xc0] sm:$0xff]  ;;  %v253_v38 = vld [vmem:[%s4188_s29 + $0x18] sm:$0xff]  ;;  %v556_v44 = vpack.c.bf16 %v268_v37, %v252_v36  ;;  %p3991_p4 = pneg %p3990_p2 }
  0x35   : > { %1918 = vmatpush.bf16.msra.mxu3 %v3650_v11  ;;  %v250_v32 = vld [vmem:[%s4188_s29] sm:$0xff]  ;;  %v251_v34 = vld [vmem:[%s4188_s29 + $0x8] sm:$0xff]  ;;  %v269_v39 = vld [vmem:[%s4188_s29 + $0x98] sm:$0xff] }
  0x36   : > { %1745 = vmatpush.bf16.msra.mxu0 %v3625_v12  ;;  %v266_v33 = vld [vmem:[%s4188_s29 + $0x80] sm:$0xff]  ;;  %v267_v35 = vld [vmem:[%s4188_s29 + $0x88] sm:$0xff]  ;;  %v3676_v40 = vld [vmem:[#allocation5 + $0x1b8] sm:$0xff]  ;;  %v557_v45 = vpack.c.bf16 %v269_v39, %v253_v38  ;;  %p3996_p0 = pnand %p3995_p13, %p3991_p4 }
  0x37   : > { %1803 = vmatpush.bf16.msra.mxu1 %v3633_v13  ;;  %v3660_v41 = vld [vmem:[#allocation5 + $0x138] sm:$0xff]  ;;  %v554_v42 = vpack.c.bf16 %v266_v33, %v250_v32  ;;  %v555_v43 = vpack.c.bf16 %v267_v35, %v251_v34  ;;  %v3675_v48 = vld [vmem:[#allocation5 + $0x1b0] sm:$0xff]  ;;  %v3674_v52 = vld [vmem:[#allocation5 + $0x1a8] sm:$0xff] }
  0x38   : > { %1861 = vmatpush.bf16.msra.mxu2 %v3641_v14  ;;  %v3684_v46 = vld [vmem:[#allocation5 + $0x1f8] sm:$0xff]  ;;  %v3659_v49 = vld [vmem:[#allocation5 + $0x130] sm:$0xff]  ;;  %v3658_v53 = vld [vmem:[#allocation5 + $0x128] sm:$0xff] }
  0x39   : > { %1919 = vmatpush.bf16.msra.mxu3 %v3649_v15  ;;  %v3668_v47 = vld [vmem:[#allocation5 + $0x178] sm:$0xff]  ;;  %v3683_v50 = vld [vmem:[#allocation5 + $0x1f0] sm:$0xff]  ;;  %v3682_v54 = vld [vmem:[#allocation5 + $0x1e8] sm:$0xff] }
  0x3a   : > { %1746 = vmatpush.bf16.msra.mxu0 %v3624_v16  ;;  %v3667_v51 = vld [vmem:[#allocation5 + $0x170] sm:$0xff]  ;;  %v3666_v55 = vld [vmem:[#allocation5 + $0x168] sm:$0xff]  ;;  %v282_v56 = vld [vmem:[%s4188_s29 + $0x100] sm:$0xff] }
  0x3b   : > { %1804 = vmatpush.bf16.msra.mxu1 %v3632_v17  ;;  %v298_v57 = vld [vmem:[%s4188_s29 + $0x180] sm:$0xff]  ;;  %v283_v58 = vld [vmem:[%s4188_s29 + $0x108] sm:$0xff]  ;;  %v284_v60 = vld [vmem:[%s4188_s29 + $0x110] sm:$0xff] }
  0x3c   : > { %1862 = vmatpush.bf16.msra.mxu2 %v3640_v18  ;;  %v299_v59 = vld [vmem:[%s4188_s29 + $0x188] sm:$0xff]  ;;  %v300_v61 = vld [vmem:[%s4188_s29 + $0x190] sm:$0xff]  ;;  %v285_v62 = vld [vmem:[%s4188_s29 + $0x118] sm:$0xff]  ;;  %v570_v0 = vpack.c.bf16 %v298_v57, %v282_v56 }
  0x3d   : > { %1920 = vmatpush.bf16.msra.mxu3 %v3648_v19  ;;  %v301_v63 = vld [vmem:[%s4188_s29 + $0x198] sm:$0xff]  ;;  %v571_v1 = vpack.c.bf16 %v299_v59, %v283_v58  ;;  %v572_v2 = vpack.c.bf16 %v300_v61, %v284_v60  ;;  %v3673_v4 = vld [vmem:[#allocation5 + $0x1a0] sm:$0xff]  ;;  %v315_v9 = vld [vmem:[%s4188_s29 + $0x208] sm:$0xff] }
  0x3e   : > { %1747 = vmatpush.bf16.msra.mxu0 %v3623_v20  ;;  %v573_v3 = vpack.c.bf16 %v301_v63, %v285_v62  ;;  %v3657_v5 = vld [vmem:[#allocation5 + $0x120] sm:$0xff]  ;;  %v331_v10 = vld [vmem:[%s4188_s29 + $0x288] sm:$0xff]  ;;  %v316_v11 = vld [vmem:[%s4188_s29 + $0x210] sm:$0xff] }
  0x3f   : > { %1805 = vmatpush.bf16.msra.mxu1 %v3631_v21  ;;  %v3681_v6 = vld [vmem:[#allocation5 + $0x1e0] sm:$0xff]  ;;  %v332_v12 = vld [vmem:[%s4188_s29 + $0x290] sm:$0xff]  ;;  %v317_v13 = vld [vmem:[%s4188_s29 + $0x218] sm:$0xff]  ;;  %v587_v16 = vpack.c.bf16 %v331_v10, %v315_v9 }
  0x40   : > { %1863 = vmatpush.bf16.msra.mxu2 %v3639_v22  ;;  %v314_v7 = vld [vmem:[%s4188_s29 + $0x200] sm:$0xff]  ;;  %v333_v14 = vld [vmem:[%s4188_s29 + $0x298] sm:$0xff]  ;;  %v588_v17 = vpack.c.bf16 %v332_v12, %v316_v11  ;;  %v347_v22 = vld [vmem:[%s4188_s29 + $0x308] sm:$0xff] }
  0x41   : > { %1921 = vmatpush.bf16.msra.mxu3 %v3647_v23  ;;  %v330_v8 = vld [vmem:[%s4188_s29 + $0x280] sm:$0xff]  ;;  %v589_v18 = vpack.c.bf16 %v333_v14, %v317_v13  ;;  %v363_v23 = vld [vmem:[%s4188_s29 + $0x388] sm:$0xff]  ;;  %v3672_v32 = vld [vmem:[#allocation5 + $0x198] sm:$0xff] }
  0x42   : > { %1748 = vmatpush.bf16.msra.mxu0 %v3622_v24  ;;  %v586_v15 = vpack.c.bf16 %v330_v8, %v314_v7  ;;  %v3665_v19 = vld [vmem:[#allocation5 + $0x160] sm:$0xff]  ;;  %v348_v24 = vld [vmem:[%s4188_s29 + $0x310] sm:$0xff]  ;;  %v3656_v33 = vld [vmem:[#allocation5 + $0x118] sm:$0xff] }
  0x43   : > { %1806 = vmatpush.bf16.msra.mxu1 %v3630_v25  ;;  %v346_v20 = vld [vmem:[%s4188_s29 + $0x300] sm:$0xff]  ;;  %v364_v25 = vld [vmem:[%s4188_s29 + $0x390] sm:$0xff]  ;;  %v3680_v34 = vld [vmem:[#allocation5 + $0x1d8] sm:$0xff] }
  0x44   : > { %1864 = vmatpush.bf16.msra.mxu2 %v3638_v26  ;;  %v362_v21 = vld [vmem:[%s4188_s29 + $0x380] sm:$0xff]  ;;  %v349_v26 = vld [vmem:[%s4188_s29 + $0x318] sm:$0xff]  ;;  %v379_v38 = vld [vmem:[%s4188_s29 + $0x408] sm:$0xff] }
  0x45   : > { %1922 = vmatpush.bf16.msra.mxu3 %v3646_v27  ;;  %v365_v27 = vld [vmem:[%s4188_s29 + $0x398] sm:$0xff]  ;;  %v378_v36 = vld [vmem:[%s4188_s29 + $0x400] sm:$0xff]  ;;  %v395_v39 = vld [vmem:[%s4188_s29 + $0x488] sm:$0xff] }
  0x46   : > { %1749 = vmatpush.bf16.msra.mxu0 %v3621_v28  ;;  %v602_v28 = vpack.c.bf16 %v362_v21, %v346_v20  ;;  %v3664_v35 = vld [vmem:[#allocation5 + $0x158] sm:$0xff]  ;;  %v394_v37 = vld [vmem:[%s4188_s29 + $0x480] sm:$0xff]  ;;  %v412_v56 = vld [vmem:[%s4188_s29 + $0x510] sm:$0xff] }
  0x47   : > { %1807 = vmatpush.bf16.msra.mxu1 %v3629_v29  ;;  %v603_v29 = vpack.c.bf16 %v363_v23, %v347_v22  ;;  %v428_v57 = vld [vmem:[%s4188_s29 + $0x590] sm:$0xff]  ;;  %v413_v58 = vld [vmem:[%s4188_s29 + $0x518] sm:$0xff]  ;;  %v459_v7 = vld [vmem:[%s4188_s29 + $0x688] sm:$0xff] }
  0x48   : > { %1865 = vmatpush.bf16.msra.mxu2 %v3637_v30  ;;  %v604_v30 = vpack.c.bf16 %v364_v25, %v348_v24  ;;  %v429_v59 = vld [vmem:[%s4188_s29 + $0x598] sm:$0xff]  ;;  %v636_v62 = vpack.c.bf16 %v428_v57, %v412_v56  ;;  %v444_v8 = vld [vmem:[%s4188_s29 + $0x610] sm:$0xff] }
  0x49   : > { %1923 = vmatpush.bf16.msra.mxu3 %v3645_v31  ;;  %1750 = vmatmul.bf16.vlgmr.msra.gmra.mxu0 %v554_v42  ;;  %v605_v31 = vpack.c.bf16 %v365_v27, %v349_v26  ;;  %v381_v42 = vld [vmem:[%s4188_s29 + $0x418] sm:$0xff]  ;;  %v637_v63 = vpack.c.bf16 %v429_v59, %v413_v58  ;;  %v460_v9 = vld [vmem:[%s4188_s29 + $0x690] sm:$0xff] }
  0x4a   : > { %1974 = vmatpush.bf16.msrb.mxu0 %v3660_v41  ;;  %1808 = vmatmul.bf16.vlgmr.msra.gmra.mxu1 %v555_v43  ;;  %v396_v41 = vld [vmem:[%s4188_s29 + $0x490] sm:$0xff]  ;;  %v397_v43 = vld [vmem:[%s4188_s29 + $0x498] sm:$0xff]  ;;  %v652_v14 = vpack.c.bf16 %v460_v9, %v444_v8 }
  0x4b   : > { %1866 = vmatmul.bf16.vlgmr.msra.gmra.mxu2 %v556_v44  ;;  %2032 = vmatpush.bf16.msrb.mxu1 %v3668_v47  ;;  %v618_v44 = vpack.c.bf16 %v394_v37, %v378_v36  ;;  %v621_v47 = vpack.c.bf16 %v397_v43, %v381_v42  ;;  %v445_v10 = vld [vmem:[%s4188_s29 + $0x618] sm:$0xff]  ;;  %v476_v20 = vld [vmem:[%s4188_s29 + $0x710] sm:$0xff]  ;;  %v523_v36 = vld [vmem:[%s4188_s29 + $0x888] sm:$0xff] }
  0x4c   : > { %2090 = vmatpush.bf16.msrb.mxu2 %v3676_v40  ;;  %1924 = vmatmul.bf16.vlgmr.msra.gmra.mxu3 %v557_v45  ;;  %v380_v40 = vld [vmem:[%s4188_s29 + $0x410] sm:$0xff]  ;;  %v619_v45 = vpack.c.bf16 %v395_v39, %v379_v38  ;;  %v461_v11 = vld [vmem:[%s4188_s29 + $0x698] sm:$0xff] }
  0x4d   : > { %2148 = vmatpush.bf16.msrb.mxu3 %v3684_v46  ;;  %v620_v46 = vpack.c.bf16 %v396_v41, %v380_v40  ;;  %v492_v21 = vld [vmem:[%s4188_s29 + $0x790] sm:$0xff]  ;;  %v477_v22 = vld [vmem:[%s4188_s29 + $0x718] sm:$0xff] }
  0x4e   : > { %1975 = vmatpush.bf16.msrb.mxu0 %v3659_v49  ;;  %v3655_v49 = vld [vmem:[#allocation5 + $0x110] sm:$0xff]  ;;  %v493_v23 = vld [vmem:[%s4188_s29 + $0x798] sm:$0xff]  ;;  %v668_v26 = vpack.c.bf16 %v492_v21, %v476_v20  ;;  %v254_v20 = vld [vmem:[%s4188_s29 + $0x20] sm:$0xff] }
  0x4f   : > { %2033 = vmatpush.bf16.msrb.mxu1 %v3667_v51  ;;  %v3663_v51 = vld [vmem:[#allocation5 + $0x150] sm:$0xff]  ;;  %v669_v27 = vpack.c.bf16 %v493_v23, %v477_v22  ;;  %v509_v39 = vld [vmem:[%s4188_s29 + $0x818] sm:$0xff]  ;;  %v270_v21 = vld [vmem:[%s4188_s29 + $0xa0] sm:$0xff] }
  0x50   : > { %2091 = vmatpush.bf16.msrb.mxu2 %v3675_v48  ;;  %v3671_v48 = vld [vmem:[#allocation5 + $0x190] sm:$0xff]  ;;  %v525_v40 = vld [vmem:[%s4188_s29 + $0x898] sm:$0xff] }
  0x51   : > { %2149 = vmatpush.bf16.msrb.mxu3 %v3683_v50  ;;  %v3679_v50 = vld [vmem:[#allocation5 + $0x1d0] sm:$0xff]  ;;  %v3700_v59 = vld [vmem:[#allocation5 + $0x278] sm:$0xff] }
  0x52   : > { %1976 = vmatpush.bf16.msrb.mxu0 %v3658_v53  ;;  %v426_v53 = vld [vmem:[%s4188_s29 + $0x580] sm:$0xff]  ;;  %v508_v37 = vld [vmem:[%s4188_s29 + $0x810] sm:$0xff] }
  0x53   : > { %2034 = vmatpush.bf16.msrb.mxu1 %v3666_v55  ;;  %v427_v55 = vld [vmem:[%s4188_s29 + $0x588] sm:$0xff]  ;;  %v524_v38 = vld [vmem:[%s4188_s29 + $0x890] sm:$0xff] }
  0x54   : > { %2092 = vmatpush.bf16.msrb.mxu2 %v3674_v52  ;;  %v410_v52 = vld [vmem:[%s4188_s29 + $0x500] sm:$0xff]  ;;  %v3707_v22 = vld [vmem:[#allocation5 + $0x2b0] sm:$0xff] }
  0x55   : > { %2150 = vmatpush.bf16.msrb.mxu3 %v3682_v54  ;;  %v411_v54 = vld [vmem:[%s4188_s29 + $0x508] sm:$0xff]  ;;  %v634_v60 = vpack.c.bf16 %v426_v53, %v410_v52 }
  0x56   : > { %1977 = vmatpush.bf16.msrb.mxu0 %v3657_v5  ;;  %v635_v61 = vpack.c.bf16 %v427_v55, %v411_v54  ;;  %v458_v5 = vld [vmem:[%s4188_s29 + $0x680] sm:$0xff] }
  0x57   : > { %2035 = vmatpush.bf16.msrb.mxu1 %v3665_v19  ;;  %v491_v19 = vld [vmem:[%s4188_s29 + $0x788] sm:$0xff] }
  0x58   : > { %2093 = vmatpush.bf16.msrb.mxu2 %v3673_v4  ;;  %v442_v4 = vld [vmem:[%s4188_s29 + $0x600] sm:$0xff] }
  0x59   : > { %1755 = vmatmul.bf16.gmra.mxu0 %v570_v0  ;;  %2151 = vmatpush.bf16.msrb.mxu3 %v3681_v6  ;;  %v3670_v0 = vld [vmem:[#allocation5 + $0x188] sm:$0xff]  ;;  %v650_v12 = vpack.c.bf16 %v458_v5, %v442_v4 }
  0x5a   : > { %1813 = vmatmul.bf16.gmra.mxu1 %v571_v1  ;;  %1978 = vmatpush.bf16.msrb.mxu0 %v3656_v33  ;;  %v3654_v1 = vld [vmem:[#allocation5 + $0x108] sm:$0xff]  ;;  %v506_v33 = vld [vmem:[%s4188_s29 + $0x800] sm:$0xff] }
  0x5b   : > { %1871 = vmatmul.bf16.gmra.mxu2 %v572_v2  ;;  %2036 = vmatpush.bf16.msrb.mxu1 %v3664_v35  ;;  %v3678_v2 = vld [vmem:[#allocation5 + $0x1c8] sm:$0xff] }
  0x5c   : > { %1929 = vmatmul.bf16.gmra.mxu3 %v573_v3  ;;  %2094 = vmatpush.bf16.msrb.mxu2 %v3672_v32  ;;  %v3662_v3 = vld [vmem:[#allocation5 + $0x148] sm:$0xff]  ;;  %v4262_v32 = vld [vmem:[#allocation7] ss:$0 sm:$0xff] }
  0x5d   : > { %2152 = vmatpush.bf16.msrb.mxu3 %v3680_v34  ;;  %v443_v6 = vld [vmem:[%s4188_s29 + $0x608] sm:$0xff]  ;;  %v522_v34 = vld [vmem:[%s4188_s29 + $0x880] sm:$0xff] }
  0x5e   : > { %1979 = vmatpush.bf16.msrb.mxu0 %v3655_v49  ;;  %v651_v13 = vpack.c.bf16 %v459_v7, %v443_v6  ;;  %v507_v35 = vld [vmem:[%s4188_s29 + $0x808] sm:$0xff]  ;;  %v682_v41 = vpack.c.bf16 %v522_v34, %v506_v33  ;;  %v3708_v49 = vld [vmem:[#allocation5 + $0x2b8] sm:$0xff] }
  0x5f   : > { %2037 = vmatpush.bf16.msrb.mxu1 %v3663_v51  ;;  %v683_v42 = vpack.c.bf16 %v523_v36, %v507_v35  ;;  %v3716_v51 = vld [vmem:[#allocation5 + $0x2f8] sm:$0xff]  ;;  %v558_v36 = vpack.c.bf16 %v270_v21, %v254_v20 }
  0x60   : > { %2095 = vmatpush.bf16.msrb.mxu2 %v3671_v48  ;;  %v273_v33 = vld [vmem:[%s4188_s29 + $0xb8] sm:$0xff] }
  0x61   : > { %2153 = vmatpush.bf16.msrb.mxu3 %v3679_v50  ;;  %v3692_v50 = vld [vmem:[#allocation5 + $0x238] sm:$0xff] }
  0x62   : > { %1980 = vmatpush.bf16.msrb.mxu0 %v3654_v1 }
  0x63   : > { %2038 = vmatpush.bf16.msrb.mxu1 %v3662_v3 }
  0x64   : > { %2096 = vmatpush.bf16.msrb.mxu2 %v3670_v0  ;;  %v541_v0 = vld [vmem:[%s4188_s29 + $0x918] sm:$0xff] }
  0x65   : > { %2154 = vmatpush.bf16.msrb.mxu3 %v3678_v2  ;;  %v701_v9 = vpack.c.bf16 %v541_v0, %v541_v0  ;;  %v289_v0 = vld [vmem:[%s4188_s29 + $0x138] sm:$0xff] }
  0x69   : > { %1760 = vmatmul.bf16.gmra.mxu0 %v586_v15  ;;  %v653_v15 = vpack.c.bf16 %v461_v11, %v445_v10 }
  0x6a   : > { %1818 = vmatmul.bf16.gmra.mxu1 %v587_v16  ;;  %v474_v16 = vld [vmem:[%s4188_s29 + $0x700] sm:$0xff] }
  0x6b   : > { %1876 = vmatmul.bf16.gmra.mxu2 %v588_v17  ;;  %v490_v17 = vld [vmem:[%s4188_s29 + $0x780] sm:$0xff] }
  0x6c   : > { %1934 = vmatmul.bf16.gmra.mxu3 %v589_v18  ;;  %v475_v18 = vld [vmem:[%s4188_s29 + $0x708] sm:$0xff]  ;;  %v666_v24 = vpack.c.bf16 %v490_v17, %v474_v16 }
  0x6d   : > { %v667_v25 = vpack.c.bf16 %v491_v19, %v475_v18 }
  0x79   : > { %1765 = vmatmul.bf16.gmra.mxu0 %v602_v28  ;;  %v3669_v28 = vld [vmem:[#allocation5 + $0x180] sm:$0xff] }
  0x7a   : > { %1823 = vmatmul.bf16.gmra.mxu1 %v603_v29  ;;  %v3653_v29 = vld [vmem:[#allocation5 + $0x100] sm:$0xff]  ;;  %2097 = vmatpush.bf16.msrb.mxu2 %v3669_v28  ;;  %v271_v28 = vld [vmem:[%s4188_s29 + $0xa8] sm:$0xff] }
  0x7b   : > { %1881 = vmatmul.bf16.gmra.mxu2 %v604_v30  ;;  %v3677_v30 = vld [vmem:[#allocation5 + $0x1c0] sm:$0xff]  ;;  %1981 = vmatpush.bf16.msrb.mxu0 %v3653_v29  ;;  %v256_v29 = vld [vmem:[%s4188_s29 + $0x30] sm:$0xff] }
  0x7c   : > { %1939 = vmatmul.bf16.gmra.mxu3 %v605_v31  ;;  %v3661_v31 = vld [vmem:[#allocation5 + $0x140] sm:$0xff] }
  0x7d   : > { %2155 = vmatpush.bf16.msrb.mxu3 %v3677_v30  ;;  %2039 = vmatpush.bf16.msrb.mxu1 %v3661_v31  ;;  %v272_v30 = vld [vmem:[%s4188_s29 + $0xb0] sm:$0xff]  ;;  %v257_v31 = vld [vmem:[%s4188_s29 + $0x38] sm:$0xff] }
  0x7e   : > { %2322 = vmatpush.bf16.msra.mxu2 %v3708_v49 }
  0x7f   : > { %2206 = vmatpush.bf16.msra.mxu0 %v3692_v50 }
  0x81   : > { %2380 = vmatpush.bf16.msra.mxu3 %v3716_v51  ;;  %2264 = vmatpush.bf16.msra.mxu1 %v3700_v59  ;;  %v3714_v59 = vld [vmem:[#allocation5 + $0x2e8] sm:$0xff] }
  0x82   : > { %2323 = vmatpush.bf16.msra.mxu2 %v3707_v22 }
  0x89   : > { %1770 = vmatmul.bf16.gmra.mxu0 %v618_v44 }
  0x8a   : > { %1828 = vmatmul.bf16.gmra.mxu1 %v619_v45  ;;  %v684_v45 = vpack.c.bf16 %v524_v38, %v508_v37 }
  0x8b   : > { %1886 = vmatmul.bf16.gmra.mxu2 %v620_v46  ;;  %v685_v46 = vpack.c.bf16 %v525_v40, %v509_v39 }
  0x8c   : > { %1944 = vmatmul.bf16.gmra.mxu3 %v621_v47 }
  0x99   : > { %1775 = vmatmul.bf16.gmra.mxu0 %v634_v60 }
  0x9a   : > { %1833 = vmatmul.bf16.gmra.mxu1 %v635_v61  ;;  %v538_v61 = vld [vmem:[%s4188_s29 + $0x900] sm:$0xff] }
  0x9b   : > { %1891 = vmatmul.bf16.gmra.mxu2 %v636_v62  ;;  %v539_v62 = vld [vmem:[%s4188_s29 + $0x908] sm:$0xff]  ;;  %v698_v3 = vpack.c.bf16 %v538_v61, %v538_v61 }
  0x9c   : > { %1949 = vmatmul.bf16.gmra.mxu3 %v637_v63  ;;  %v540_v63 = vld [vmem:[%s4188_s29 + $0x910] sm:$0xff]  ;;  %v699_v4 = vpack.c.bf16 %v539_v62, %v539_v62  ;;  %v303_v61 = vld [vmem:[%s4188_s29 + $0x1a8] sm:$0xff] }
  0x9d   : > { %v700_v8 = vpack.c.bf16 %v540_v63, %v540_v63  ;;  %v288_v62 = vld [vmem:[%s4188_s29 + $0x130] sm:$0xff] }
  0x9e   : > { %v304_v63 = vld [vmem:[%s4188_s29 + $0x1b0] sm:$0xff] }
  0xa9   : > { %1780 = vmatmul.bf16.gmra.mxu0 %v650_v12 }
  0xaa   : > { %1838 = vmatmul.bf16.gmra.mxu1 %v651_v13 }
  0xab   : > { %1896 = vmatmul.bf16.gmra.mxu2 %v652_v14 }
  0xac   : > { %1954 = vmatmul.bf16.gmra.mxu3 %v653_v15 }
  0xb9   : > { %1785 = vmatmul.bf16.gmra.mxu0 %v666_v24  ;;  %v3691_v24 = vld [vmem:[#allocation5 + $0x230] sm:$0xff] }
  0xba   : > { %1843 = vmatmul.bf16.gmra.mxu1 %v667_v25  ;;  %v3715_v25 = vld [vmem:[#allocation5 + $0x2f0] sm:$0xff]  ;;  %2207 = vmatpush.bf16.msra.mxu0 %v3691_v24 }
  0xbb   : > { %1901 = vmatmul.bf16.gmra.mxu2 %v668_v26  ;;  %v3699_v26 = vld [vmem:[#allocation5 + $0x270] sm:$0xff]  ;;  %2381 = vmatpush.bf16.msra.mxu3 %v3715_v25  ;;  %v318_v25 = vld [vmem:[%s4188_s29 + $0x220] sm:$0xff] }
  0xbc   : > { %1959 = vmatmul.bf16.gmra.mxu3 %v669_v27  ;;  %v255_v27 = vld [vmem:[%s4188_s29 + $0x28] sm:$0xff]  ;;  %2265 = vmatpush.bf16.msra.mxu1 %v3699_v26  ;;  %v334_v26 = vld [vmem:[%s4188_s29 + $0x2a0] sm:$0xff] }
  0xbd   : > { %v559_v37 = vpack.c.bf16 %v271_v28, %v255_v27  ;;  %v319_v27 = vld [vmem:[%s4188_s29 + $0x228] sm:$0xff] }
  0xbe   : > { %v335_v28 = vld [vmem:[%s4188_s29 + $0x2a8] sm:$0xff] }
  0xbf   : > { %2382 = vmatpush.bf16.msra.mxu3 %v3714_v59 }
  0xc6   : > { %v1751_v43 = vpop.f32.mrf.mxu0 }
  0xc7   : > { %v1809_v44 = vpop.f32.mrf.mxu1  ;;  %v1752_v47 = vadd.f32 %v4262_v32, %v1751_v43 }
  0xc9   : > { %v1810_v48 = vadd.f32 %v1809_v44, %v1752_v47  ;;  %1790 = vmatmul.bf16.gmra.mxu0 %v682_v41  ;;  %v560_v41 = vpack.c.bf16 %v272_v30, %v256_v29  ;;  %v320_v29 = vld [vmem:[%s4188_s29 + $0x230] sm:$0xff] }
  0xca   : > { %1848 = vmatmul.bf16.gmra.mxu1 %v683_v42  ;;  %v561_v42 = vpack.c.bf16 %v273_v33, %v257_v31  ;;  %v336_v30 = vld [vmem:[%s4188_s29 + $0x2b0] sm:$0xff]  ;;  %v321_v31 = vld [vmem:[%s4188_s29 + $0x238] sm:$0xff] }
  0xcb   : > { %1906 = vmatmul.bf16.gmra.mxu2 %v684_v45  ;;  %v337_v33 = vld [vmem:[%s4188_s29 + $0x2b8] sm:$0xff] }
  0xcc   : > { %1964 = vmatmul.bf16.gmra.mxu3 %v685_v46 }
  0xce   : > { %v1867_v52 = vpop.f32.mrf.mxu2  ;;  %v1753_v55 = vpop.f32.mrf.mxu0 }
  0xcf   : > { %v1925_v53 = vpop.f32.mrf.mxu3  ;;  %v1868_v54 = vadd.f32 %v1867_v52, %v1810_v48  ;;  %v1811_v56 = vpop.f32.mrf.mxu1  ;;  %v1754_v57 = vadd.f32 %v4262_v32, %v1753_v55 }
  0xd1   : > { %v4274_v58 = vadd.f32 %v1925_v53, %v1868_v54  ;;  %v1812_v60 = vadd.f32 %v1811_v56, %v1754_v57  ;;  %v286_v53 = vld [vmem:[%s4188_s29 + $0x120] sm:$0xff]  ;;  %v3706_v56 = vld [vmem:[#allocation5 + $0x2a8] sm:$0xff] }
  0xd2   : > { %v302_v54 = vld [vmem:[%s4188_s29 + $0x1a0] sm:$0xff]  ;;  %v3690_v57 = vld [vmem:[#allocation5 + $0x228] sm:$0xff]  ;;  %2324 = vmatpush.bf16.msra.mxu2 %v3706_v56 }
  0xd3   : > { %2208 = vmatpush.bf16.msra.mxu0 %v3690_v57 }
  0xd6   : > { %v1869_v1 = vpop.f32.mrf.mxu2  ;;  %v1756_v6 = vpop.f32.mrf.mxu0 }
  0xd7   : > { %v1927_v2 = vpop.f32.mrf.mxu3  ;;  %v1870_v5 = vadd.f32 %v1869_v1, %v1812_v60  ;;  %v1814_v7 = vpop.f32.mrf.mxu1  ;;  %v1757_v10 = vadd.f32 %v4262_v32, %v1756_v6  ;;  %v287_v60 = vld [vmem:[%s4188_s29 + $0x128] sm:$0xff]  ;;  %v305_v1 = vld [vmem:[%s4188_s29 + $0x1b8] sm:$0xff] }
  0xd9   : > { %v4281_v11 = vadd.f32 %v1927_v2, %v1870_v5  ;;  %v1815_v12 = vadd.f32 %v1814_v7, %v1757_v10  ;;  %1795 = vmatmul.bf16.gmra.mxu0 %v698_v3  ;;  %v575_v5 = vpack.c.bf16 %v303_v61, %v287_v60  ;;  %v577_v10 = vpack.c.bf16 %v305_v1, %v289_v0  ;;  %v350_v61 = vld [vmem:[%s4188_s29 + $0x320] sm:$0xff]  ;;  %v367_v0 = vld [vmem:[%s4188_s29 + $0x3a8] sm:$0xff]  ;;  %v352_v1 = vld [vmem:[%s4188_s29 + $0x330] sm:$0xff] }
  0xda   : > { %1853 = vmatmul.bf16.gmra.mxu1 %v699_v4  ;;  %v574_v4 = vpack.c.bf16 %v302_v54, %v286_v53 }
  0xdb   : > { %1911 = vmatmul.bf16.gmra.mxu2 %v700_v8 }
  0xdc   : > { %1969 = vmatmul.bf16.gmra.mxu3 %v701_v9  ;;  %v576_v9 = vpack.c.bf16 %v304_v63, %v288_v62  ;;  %v366_v62 = vld [vmem:[%s4188_s29 + $0x3a0] sm:$0xff]  ;;  %v351_v63 = vld [vmem:[%s4188_s29 + $0x328] sm:$0xff] }
  0xde   : > { %v1872_v13 = vpop.f32.mrf.mxu2  ;;  %v1758_v16 = vpop.f32.mrf.mxu0 }
  0xdf   : > { %v1930_v14 = vpop.f32.mrf.mxu3  ;;  %v1873_v15 = vadd.f32 %v1872_v13, %v1815_v12  ;;  %v1816_v17 = vpop.f32.mrf.mxu1  ;;  %v1759_v18 = vadd.f32 %v4262_v32, %v1758_v16 }
  0xe1   : > { %v4284_v19 = vadd.f32 %v1930_v14, %v1873_v15  ;;  %v1817_v23 = vadd.f32 %v1816_v17, %v1759_v18  ;;  %v3698_v14 = vld [vmem:[#allocation5 + $0x268] sm:$0xff] }
  0xe2   : > { %2266 = vmatpush.bf16.msra.mxu1 %v3698_v14 }
  0xe6   : > { %v1874_v34 = vpop.f32.mrf.mxu2  ;;  %v1761_v39 = vpop.f32.mrf.mxu0 }
  0xe7   : > { %v1932_v35 = vpop.f32.mrf.mxu3  ;;  %v1875_v38 = vadd.f32 %v1874_v34, %v1817_v23  ;;  %v1819_v40 = vpop.f32.mrf.mxu1  ;;  %v1762_v43 = vadd.f32 %v4262_v32, %v1761_v39 }
  0xe9   : > { %v4295_v44 = vadd.f32 %v1932_v35, %v1875_v38  ;;  %v1820_v45 = vadd.f32 %v1819_v40, %v1762_v43  ;;  %1982 = vmatmul.bf16.vlgmr.msrb.gmra.mxu0 %v558_v36  ;;  %v590_v36 = vpack.c.bf16 %v334_v26, %v318_v25 }
  0xea   : > { %2040 = vmatmul.bf16.vlgmr.msrb.gmra.mxu1 %v559_v37  ;;  %v591_v37 = vpack.c.bf16 %v335_v28, %v319_v27 }
  0xeb   : > { %2098 = vmatmul.bf16.vlgmr.msrb.gmra.mxu2 %v560_v41  ;;  %v592_v41 = vpack.c.bf16 %v336_v30, %v320_v29 }
  0xec   : > { %2156 = vmatmul.bf16.vlgmr.msrb.gmra.mxu3 %v561_v42  ;;  %v593_v42 = vpack.c.bf16 %v337_v33, %v321_v31  ;;  %v3696_v31 = vld [vmem:[#allocation5 + $0x258] sm:$0xff] }
  0xee   : > { %v1877_v46 = vpop.f32.mrf.mxu2  ;;  %v1763_v49 = vpop.f32.mrf.mxu0 }
  0xef   : > { %v1935_v47 = vpop.f32.mrf.mxu3  ;;  %v1878_v48 = vadd.f32 %v1877_v46, %v1820_v45  ;;  %v1821_v50 = vpop.f32.mrf.mxu1  ;;  %v1764_v51 = vadd.f32 %v4262_v32, %v1763_v49  ;;  %v3705_v46 = vld [vmem:[#allocation5 + $0x2a0] sm:$0xff] }
  0xf0   : > { %v3713_v49 = vld [vmem:[#allocation5 + $0x2e0] sm:$0xff]  ;;  %2325 = vmatpush.bf16.msra.mxu2 %v3705_v46 }
  0xf1   : > { %v4298_v52 = vadd.f32 %v1935_v47, %v1878_v48  ;;  %v1822_v55 = vadd.f32 %v1821_v50, %v1764_v51  ;;  %v3689_v48 = vld [vmem:[#allocation5 + $0x220] sm:$0xff]  ;;  %2383 = vmatpush.bf16.msra.mxu3 %v3713_v49 }
  0xf2   : > { %v3697_v50 = vld [vmem:[#allocation5 + $0x260] sm:$0xff]  ;;  %2209 = vmatpush.bf16.msra.mxu0 %v3689_v48 }
  0xf3   : > { %2267 = vmatpush.bf16.msra.mxu1 %v3697_v50 }
  0xf6   : > { %v1879_v2 = vpop.f32.mrf.mxu2  ;;  %v1766_v7 = vpop.f32.mrf.mxu0 }
  0xf7   : > { %v1937_v3 = vpop.f32.mrf.mxu3  ;;  %v1880_v6 = vadd.f32 %v1879_v2, %v1822_v55  ;;  %v1824_v8 = vpop.f32.mrf.mxu1  ;;  %v1767_v12 = vadd.f32 %v4262_v32, %v1766_v7  ;;  %v368_v2 = vld [vmem:[%s4188_s29 + $0x3b0] sm:$0xff]  ;;  %v606_v7 = vpack.c.bf16 %v366_v62, %v350_v61  ;;  %2268 = vmatpush.bf16.msra.mxu1 %v3696_v31 }
  0xf8   : > { %v608_v14 = vpack.c.bf16 %v368_v2, %v352_v1  ;;  %v414_v2 = vld [vmem:[%s4188_s29 + $0x520] sm:$0xff] }
  0xf9   : > { %v4309_v13 = vadd.f32 %v1937_v3, %v1880_v6  ;;  %v1825_v15 = vadd.f32 %v1824_v8, %v1767_v12  ;;  %1987 = vmatmul.bf16.gmra.mxu0 %v574_v4  ;;  %v353_v3 = vld [vmem:[%s4188_s29 + $0x338] sm:$0xff]  ;;  %v607_v8 = vpack.c.bf16 %v367_v0, %v351_v63 }
  0xfa   : > { %2045 = vmatmul.bf16.gmra.mxu1 %v575_v5  ;;  %v369_v4 = vld [vmem:[%s4188_s29 + $0x3b8] sm:$0xff] }
  0xfb   : > { %2103 = vmatmul.bf16.gmra.mxu2 %v576_v9 }
  0xfc   : > { %2161 = vmatmul.bf16.gmra.mxu3 %v577_v10 }
  0xfe   : > { %v1882_v16 = vpop.f32.mrf.mxu2  ;;  %v1768_v20 = vpop.f32.mrf.mxu0 }
  0xff   : > { %v1940_v17 = vpop.f32.mrf.mxu3  ;;  %v1883_v18 = vadd.f32 %v1882_v16, %v1825_v15  ;;  %v1826_v21 = vpop.f32.mrf.mxu1  ;;  %v1769_v22 = vadd.f32 %v4262_v32, %v1768_v20  ;;  %v609_v15 = vpack.c.bf16 %v369_v4, %v353_v3  ;;  %v3704_v20 = vld [vmem:[#allocation5 + $0x298] sm:$0xff]  ;;  %v430_v3 = vld [vmem:[%s4188_s29 + $0x5a0] sm:$0xff]  ;;  %v3703_v4 = vld [vmem:[#allocation5 + $0x290] sm:$0xff] }
 0x100   : > { %2326 = vmatpush.bf16.msra.mxu2 %v3704_v20 }
 0x101   : > { %v4312_v23 = vadd.f32 %v1940_v17, %v1883_v18  ;;  %v1827_v24 = vadd.f32 %v1826_v21, %v1769_v22  ;;  %v3688_v21 = vld [vmem:[#allocation5 + $0x218] sm:$0xff] }
 0x102   : > { %v3712_v22 = vld [vmem:[#allocation5 + $0x2d8] sm:$0xff]  ;;  %2210 = vmatpush.bf16.msra.mxu0 %v3688_v21  ;;  %v638_v21 = vpack.c.bf16 %v430_v3, %v414_v2 }
 0x103   : > { %2384 = vmatpush.bf16.msra.mxu3 %v3712_v22 }
 0x104   : > { %2327 = vmatpush.bf16.msra.mxu2 %v3703_v4 }
 0x106   : > { %v1884_v34 = vpop.f32.mrf.mxu2  ;;  %v1771_v39 = vpop.f32.mrf.mxu0 }
 0x107   : > { %v1942_v35 = vpop.f32.mrf.mxu3  ;;  %v1885_v38 = vadd.f32 %v1884_v34, %v1827_v24  ;;  %v1829_v40 = vpop.f32.mrf.mxu1  ;;  %v1772_v43 = vadd.f32 %v4262_v32, %v1771_v39  ;;  %v382_v34 = vld [vmem:[%s4188_s29 + $0x420] sm:$0xff]  ;;  %v400_v39 = vld [vmem:[%s4188_s29 + $0x4b0] sm:$0xff] }
 0x109   : > { %v4323_v45 = vadd.f32 %v1942_v35, %v1885_v38  ;;  %v1830_v47 = vadd.f32 %v1829_v40, %v1772_v43  ;;  %1992 = vmatmul.bf16.gmra.mxu0 %v590_v36  ;;  %v398_v35 = vld [vmem:[%s4188_s29 + $0x4a0] sm:$0xff]  ;;  %v383_v36 = vld [vmem:[%s4188_s29 + $0x428] sm:$0xff]  ;;  %v384_v38 = vld [vmem:[%s4188_s29 + $0x430] sm:$0xff] }
 0x10a   : > { %2050 = vmatmul.bf16.gmra.mxu1 %v591_v37  ;;  %v399_v37 = vld [vmem:[%s4188_s29 + $0x4a8] sm:$0xff]  ;;  %v385_v40 = vld [vmem:[%s4188_s29 + $0x438] sm:$0xff]  ;;  %v622_v46 = vpack.c.bf16 %v398_v35, %v382_v34 }
 0x10b   : > { %2108 = vmatmul.bf16.gmra.mxu2 %v592_v41  ;;  %v401_v41 = vld [vmem:[%s4188_s29 + $0x4b8] sm:$0xff] }
 0x10c   : > { %2166 = vmatmul.bf16.gmra.mxu3 %v593_v42 }
 0x10e   : > { %v1887_v51 = vpop.f32.mrf.mxu2  ;;  %v1773_v55 = vpop.f32.mrf.mxu0 }
 0x10f   : > { %v1945_v53 = vpop.f32.mrf.mxu3  ;;  %v1888_v54 = vadd.f32 %v1887_v51, %v1830_v47  ;;  %v1831_v56 = vpop.f32.mrf.mxu1  ;;  %v1774_v57 = vadd.f32 %v4262_v32, %v1773_v55  ;;  %v623_v47 = vpack.c.bf16 %v399_v37, %v383_v36  ;;  %v624_v51 = vpack.c.bf16 %v400_v39, %v384_v38 }
 0x111   : > { %v4326_v59 = vadd.f32 %v1945_v53, %v1888_v54  ;;  %v1832_v60 = vadd.f32 %v1831_v56, %v1774_v57  ;;  %v625_v53 = vpack.c.bf16 %v401_v41, %v385_v40  ;;  %v3702_v41 = vld [vmem:[#allocation5 + $0x288] sm:$0xff] }
 0x112   : > { %2328 = vmatpush.bf16.msra.mxu2 %v3702_v41 }
 0x116   : > { %v1889_v5 = vpop.f32.mrf.mxu2  ;;  %v1776_v10 = vpop.f32.mrf.mxu0 }
 0x117   : > { %v1947_v6 = vpop.f32.mrf.mxu3  ;;  %v1890_v9 = vadd.f32 %v1889_v5, %v1832_v60  ;;  %v1834_v12 = vpop.f32.mrf.mxu1  ;;  %v1777_v16 = vadd.f32 %v4262_v32, %v1776_v10  ;;  %v431_v10 = vld [vmem:[%s4188_s29 + $0x5a8] sm:$0xff] }
 0x119   : > { %v4337_v17 = vadd.f32 %v1947_v6, %v1890_v9  ;;  %v1835_v18 = vadd.f32 %v1834_v12, %v1777_v16  ;;  %1997 = vmatmul.bf16.gmra.mxu0 %v606_v7  ;;  %v3687_v6 = vld [vmem:[#allocation5 + $0x210] sm:$0xff]  ;;  %v415_v9 = vld [vmem:[%s4188_s29 + $0x528] sm:$0xff]  ;;  %v433_v16 = vld [vmem:[%s4188_s29 + $0x5b8] sm:$0xff] }
 0x11a   : > { %2055 = vmatmul.bf16.gmra.mxu1 %v607_v8  ;;  %v3711_v7 = vld [vmem:[#allocation5 + $0x2d0] sm:$0xff]  ;;  %2211 = vmatpush.bf16.msra.mxu0 %v3687_v6  ;;  %v639_v22 = vpack.c.bf16 %v431_v10, %v415_v9 }
 0x11b   : > { %2113 = vmatmul.bf16.gmra.mxu2 %v608_v14  ;;  %v3695_v8 = vld [vmem:[#allocation5 + $0x250] sm:$0xff]  ;;  %2385 = vmatpush.bf16.msra.mxu3 %v3711_v7 }
 0x11c   : > { %2171 = vmatmul.bf16.gmra.mxu3 %v609_v15  ;;  %v416_v12 = vld [vmem:[%s4188_s29 + $0x530] sm:$0xff]  ;;  %v417_v15 = vld [vmem:[%s4188_s29 + $0x538] sm:$0xff]  ;;  %2269 = vmatpush.bf16.msra.mxu1 %v3695_v8 }
 0x11d   : > { %v432_v14 = vld [vmem:[%s4188_s29 + $0x5b0] sm:$0xff] }
 0x11e   : > { %v1892_v24 = vpop.f32.mrf.mxu2  ;;  %v1778_v27 = vpop.f32.mrf.mxu0 }
 0x11f   : > { %v1950_v25 = vpop.f32.mrf.mxu3  ;;  %v1893_v26 = vadd.f32 %v1892_v24, %v1835_v18  ;;  %v1836_v28 = vpop.f32.mrf.mxu1  ;;  %v1779_v29 = vadd.f32 %v4262_v32, %v1778_v27  ;;  %v640_v27 = vpack.c.bf16 %v432_v14, %v416_v12 }
 0x121   : > { %v4340_v30 = vadd.f32 %v1950_v25, %v1893_v26  ;;  %v1837_v33 = vadd.f32 %v1836_v28, %v1779_v29  ;;  %v641_v28 = vpack.c.bf16 %v433_v16, %v417_v15 }
 0x126   : > { %v1894_v42 = vpop.f32.mrf.mxu2  ;;  %v1781_v49 = vpop.f32.mrf.mxu0 }
 0x127   : > { %v1952_v43 = vpop.f32.mrf.mxu3  ;;  %v1895_v48 = vadd.f32 %v1894_v42, %v1837_v33  ;;  %v1839_v50 = vpop.f32.mrf.mxu1  ;;  %v1782_v54 = vadd.f32 %v4262_v32, %v1781_v49  ;;  %v3686_v42 = vld [vmem:[#allocation5 + $0x208] sm:$0xff] }
 0x128   : > { %v447_v49 = vld [vmem:[%s4188_s29 + $0x628] sm:$0xff]  ;;  %2212 = vmatpush.bf16.msra.mxu0 %v3686_v42 }
 0x129   : > { %v4351_v55 = vadd.f32 %v1952_v43, %v1895_v48  ;;  %v1840_v56 = vadd.f32 %v1839_v50, %v1782_v54  ;;  %2002 = vmatmul.bf16.gmra.mxu0 %v622_v46  ;;  %v3710_v43 = vld [vmem:[#allocation5 + $0x2c8] sm:$0xff]  ;;  %v462_v48 = vld [vmem:[%s4188_s29 + $0x6a0] sm:$0xff]  ;;  %v449_v54 = vld [vmem:[%s4188_s29 + $0x638] sm:$0xff] }
 0x12a   : > { %2060 = vmatmul.bf16.gmra.mxu1 %v623_v47  ;;  %v446_v47 = vld [vmem:[%s4188_s29 + $0x620] sm:$0xff]  ;;  %v463_v50 = vld [vmem:[%s4188_s29 + $0x6a8] sm:$0xff]  ;;  %2386 = vmatpush.bf16.msra.mxu3 %v3710_v43 }
 0x12b   : > { %2118 = vmatmul.bf16.gmra.mxu2 %v624_v51  ;;  %v448_v51 = vld [vmem:[%s4188_s29 + $0x630] sm:$0xff] }
 0x12c   : > { %2176 = vmatmul.bf16.gmra.mxu3 %v625_v53  ;;  %v464_v53 = vld [vmem:[%s4188_s29 + $0x6b0] sm:$0xff] }
 0x12d   : > { %v656_v4 = vpack.c.bf16 %v464_v53, %v448_v51  ;;  %v3693_v51 = vld [vmem:[#allocation5 + $0x240] sm:$0xff] }
 0x12e   : > { %v1897_v57 = vpop.f32.mrf.mxu2  ;;  %v1783_v62 = vpop.f32.mrf.mxu0 }
 0x12f   : > { %v1955_v60 = vpop.f32.mrf.mxu3  ;;  %v1898_v61 = vadd.f32 %v1897_v57, %v1840_v56  ;;  %v1841_v63 = vpop.f32.mrf.mxu1  ;;  %v1784_v0 = vadd.f32 %v4262_v32, %v1783_v62  ;;  %v465_v56 = vld [vmem:[%s4188_s29 + $0x6b8] sm:$0xff]  ;;  %v655_v62 = vpack.c.bf16 %v463_v50, %v447_v49  ;;  %v3685_v49 = vld [vmem:[#allocation5 + $0x200] sm:$0xff] }
 0x130   : > { %v3709_v50 = vld [vmem:[#allocation5 + $0x2c0] sm:$0xff]  ;;  %2213 = vmatpush.bf16.msra.mxu0 %v3685_v49 }
 0x131   : > { %v4354_v1 = vadd.f32 %v1955_v60, %v1898_v61  ;;  %v1842_v5 = vadd.f32 %v1841_v63, %v1784_v0  ;;  %v654_v61 = vpack.c.bf16 %v462_v48, %v446_v47  ;;  %v3694_v63 = vld [vmem:[#allocation5 + $0x248] sm:$0xff]  ;;  %v3701_v47 = vld [vmem:[#allocation5 + $0x280] sm:$0xff]  ;;  %2387 = vmatpush.bf16.msra.mxu3 %v3709_v50 }
 0x132   : > { %2270 = vmatpush.bf16.msra.mxu1 %v3694_v63  ;;  %2329 = vmatpush.bf16.msra.mxu2 %v3701_v47  ;;  %v511_v63 = vld [vmem:[%s4188_s29 + $0x828] sm:$0xff] }
 0x136   : > { %v1899_v18 = vpop.f32.mrf.mxu2  ;;  %v1786_v25 = vpop.f32.mrf.mxu0  ;;  %2271 = vmatpush.bf16.msra.mxu1 %v3693_v51 }
 0x137   : > { %v1957_v20 = vpop.f32.mrf.mxu3  ;;  %v1900_v24 = vadd.f32 %v1899_v18, %v1842_v5  ;;  %v1844_v26 = vpop.f32.mrf.mxu1  ;;  %v1787_v29 = vadd.f32 %v4262_v32, %v1786_v25  ;;  %v657_v5 = vpack.c.bf16 %v465_v56, %v449_v54  ;;  %v495_v25 = vld [vmem:[%s4188_s29 + $0x7a8] sm:$0xff] }
 0x139   : > { %v4365_v31 = vadd.f32 %v1957_v20, %v1900_v24  ;;  %v1845_v33 = vadd.f32 %v1844_v26, %v1787_v29  ;;  %2007 = vmatmul.bf16.gmra.mxu0 %v638_v21  ;;  %v478_v21 = vld [vmem:[%s4188_s29 + $0x720] sm:$0xff]  ;;  %v479_v24 = vld [vmem:[%s4188_s29 + $0x728] sm:$0xff]  ;;  %v480_v26 = vld [vmem:[%s4188_s29 + $0x730] sm:$0xff] }
 0x13a   : > { %2065 = vmatmul.bf16.gmra.mxu1 %v639_v22  ;;  %v494_v22 = vld [vmem:[%s4188_s29 + $0x7a0] sm:$0xff]  ;;  %v497_v29 = vld [vmem:[%s4188_s29 + $0x7b8] sm:$0xff] }
 0x13b   : > { %2123 = vmatmul.bf16.gmra.mxu2 %v640_v27  ;;  %v496_v27 = vld [vmem:[%s4188_s29 + $0x7b0] sm:$0xff] }
 0x13c   : > { %2181 = vmatmul.bf16.gmra.mxu3 %v641_v28  ;;  %v481_v28 = vld [vmem:[%s4188_s29 + $0x738] sm:$0xff]  ;;  %v672_v41 = vpack.c.bf16 %v496_v27, %v480_v26 }
 0x13d   : > { %v673_v42 = vpack.c.bf16 %v497_v29, %v481_v28 }
 0x13e   : > { %v1902_v34 = vpop.f32.mrf.mxu2  ;;  %v1788_v37 = vpop.f32.mrf.mxu0 }
 0x13f   : > { %v1960_v35 = vpop.f32.mrf.mxu3  ;;  %v1903_v36 = vadd.f32 %v1902_v34, %v1845_v33  ;;  %v1846_v38 = vpop.f32.mrf.mxu1  ;;  %v1789_v39 = vadd.f32 %v4262_v32, %v1788_v37 }
 0x141   : > { %v4368_v40 = vadd.f32 %v1960_v35, %v1903_v36  ;;  %v1847_v46 = vadd.f32 %v1846_v38, %v1789_v39  ;;  %v670_v35 = vpack.c.bf16 %v494_v22, %v478_v21  ;;  %v671_v36 = vpack.c.bf16 %v495_v25, %v479_v24  ;;  %v3740_v22 = vld [vmem:[#allocation5 + $0x3b8] sm:$0xff] }
 0x142   : > { %v3724_v24 = vld [vmem:[#allocation5 + $0x338] sm:$0xff]  ;;  %2554 = vmatpush.bf16.msrb.mxu2 %v3740_v22 }
 0x143   : > { %v3748_v25 = vld [vmem:[#allocation5 + $0x3f8] sm:$0xff]  ;;  %2438 = vmatpush.bf16.msrb.mxu0 %v3724_v24 }
 0x144   : > { %2612 = vmatpush.bf16.msrb.mxu3 %v3748_v25 }
 0x146   : > { %v1904_v57 = vpop.f32.mrf.mxu2  ;;  %v1791_v2 = vpop.f32.mrf.mxu0 }
 0x147   : > { %v1962_v60 = vpop.f32.mrf.mxu3  ;;  %v1905_v0 = vadd.f32 %v1904_v57, %v1847_v46  ;;  %v1849_v3 = vpop.f32.mrf.mxu1  ;;  %v1792_v6 = vadd.f32 %v4262_v32, %v1791_v2  ;;  %v512_v2 = vld [vmem:[%s4188_s29 + $0x830] sm:$0xff] }
 0x149   : > { %v4379_v7 = vadd.f32 %v1962_v60, %v1905_v0  ;;  %v1850_v8 = vadd.f32 %v1849_v3, %v1792_v6  ;;  %2012 = vmatmul.bf16.gmra.mxu0 %v654_v61  ;;  %v510_v61 = vld [vmem:[%s4188_s29 + $0x820] sm:$0xff]  ;;  %v527_v0 = vld [vmem:[%s4188_s29 + $0x8a8] sm:$0xff]  ;;  %v528_v3 = vld [vmem:[%s4188_s29 + $0x8b0] sm:$0xff] }
 0x14a   : > { %2070 = vmatmul.bf16.gmra.mxu1 %v655_v62  ;;  %v526_v62 = vld [vmem:[%s4188_s29 + $0x8a0] sm:$0xff] }
 0x14b   : > { %2128 = vmatmul.bf16.gmra.mxu2 %v656_v4  ;;  %v513_v4 = vld [vmem:[%s4188_s29 + $0x838] sm:$0xff] }
 0x14c   : > { %2186 = vmatmul.bf16.gmra.mxu3 %v657_v5  ;;  %v529_v5 = vld [vmem:[%s4188_s29 + $0x8b8] sm:$0xff] }
 0x14e   : > { %v1907_v9 = vpop.f32.mrf.mxu2  ;;  %v1793_v14 = vpop.f32.mrf.mxu0 }
 0x14f   : > { %v1965_v10 = vpop.f32.mrf.mxu3  ;;  %v1908_v12 = vadd.f32 %v1907_v9, %v1850_v8  ;;  %v1851_v15 = vpop.f32.mrf.mxu1  ;;  %v1794_v16 = vadd.f32 %v4262_v32, %v1793_v14  ;;  %v686_v9 = vpack.c.bf16 %v526_v62, %v510_v61 }
 0x151   : > { %v4382_v18 = vadd.f32 %v1965_v10, %v1908_v12  ;;  %v1852_v20 = vadd.f32 %v1851_v15, %v1794_v16  ;;  %v687_v10 = vpack.c.bf16 %v527_v0, %v511_v63  ;;  %v688_v15 = vpack.c.bf16 %v528_v3, %v512_v2  ;;  %v258_v3 = vld [vmem:[%s4188_s29 + $0x40] sm:$0xff] }
 0x152   : > { %v689_v16 = vpack.c.bf16 %v529_v5, %v513_v4  ;;  %v274_v4 = vld [vmem:[%s4188_s29 + $0xc0] sm:$0xff]  ;;  %v3739_v5 = vld [vmem:[#allocation5 + $0x3b0] sm:$0xff] }
 0x153   : > { %2555 = vmatpush.bf16.msrb.mxu2 %v3739_v5  ;;  %v562_v24 = vpack.c.bf16 %v274_v4, %v258_v3 }
 0x156   : > { %v1909_v33 = vpop.f32.mrf.mxu2  ;;  %v1796_v38 = vpop.f32.mrf.mxu0 }
 0x157   : > { %v1967_v34 = vpop.f32.mrf.mxu3  ;;  %v1910_v37 = vadd.f32 %v1909_v33, %v1852_v20  ;;  %v1854_v39 = vpop.f32.mrf.mxu1  ;;  %v1797_v43 = vadd.f32 %v4262_v32, %v1796_v38  ;;  %v543_v38 = vld [vmem:[%s4188_s29 + $0x928] sm:$0xff] }
 0x159   : > { %v4393_v46 = vadd.f32 %v1967_v34, %v1910_v37  ;;  %v1855_v48 = vadd.f32 %v1854_v39, %v1797_v43  ;;  %2017 = vmatmul.bf16.gmra.mxu0 %v670_v35  ;;  %v3732_v35 = vld [vmem:[#allocation5 + $0x378] sm:$0xff]  ;;  %v542_v37 = vld [vmem:[%s4188_s29 + $0x920] sm:$0xff]  ;;  %v544_v39 = vld [vmem:[%s4188_s29 + $0x930] sm:$0xff] }
 0x15a   : > { %2075 = vmatmul.bf16.gmra.mxu1 %v671_v36  ;;  %v702_v47 = vpack.c.bf16 %v542_v37, %v542_v37 }
 0x15b   : > { %2133 = vmatmul.bf16.gmra.mxu2 %v672_v41  ;;  %2496 = vmatpush.bf16.msrb.mxu1 %v3732_v35  ;;  %v545_v41 = vld [vmem:[%s4188_s29 + $0x938] sm:$0xff] }
 0x15c   : > { %2191 = vmatmul.bf16.gmra.mxu3 %v673_v42 }
 0x15e   : > { %v1912_v32 = vpop.f32.mrf.mxu2  ;;  %v1798_v56 = vpop.f32.mrf.mxu0 }
 0x15f   : > { %v1970_v53 = vpop.f32.mrf.mxu3  ;;  %v1913_v54 = vadd.f32 %v1912_v32, %v1855_v48  ;;  %v1856_v57 = vpop.f32.mrf.mxu1  ;;  %v703_v48 = vpack.c.bf16 %v543_v38, %v543_v38  ;;  %v704_v32 = vpack.c.bf16 %v544_v39, %v544_v39 }
 0x161   : > { %v4395_v60 = vadd.f32 %v1970_v53, %v1913_v54  ;;  %v705_v53 = vpack.c.bf16 %v545_v41, %v545_v41 }
 0x166   : > { %v1914_v6 = vpop.f32.mrf.mxu2  ;;  %v1983_v12 = vpop.f32.mrf.mxu0 }
 0x167   : > { %v1972_v8 = vpop.f32.mrf.mxu3  ;;  %v2041_v14 = vpop.f32.mrf.mxu1  ;;  %v1984_v20 = vadd.f32 %v1983_v12, %v4274_v58  ;;  %v259_v12 = vld [vmem:[%s4188_s29 + $0x48] sm:$0xff] }
 0x168   : > { %v3723_v8 = vld [vmem:[#allocation5 + $0x330] sm:$0xff] }
 0x169   : > { %v2042_v21 = vadd.f32 %v2041_v14, %v1984_v20  ;;  %2022 = vmatmul.bf16.gmra.mxu0 %v686_v9  ;;  %v3747_v9 = vld [vmem:[#allocation5 + $0x3f0] sm:$0xff]  ;;  %v275_v14 = vld [vmem:[%s4188_s29 + $0xc8] sm:$0xff]  ;;  %v261_v20 = vld [vmem:[%s4188_s29 + $0x58] sm:$0xff] }
 0x16a   : > { %2080 = vmatmul.bf16.gmra.mxu1 %v687_v10  ;;  %v3731_v10 = vld [vmem:[#allocation5 + $0x370] sm:$0xff]  ;;  %2439 = vmatpush.bf16.msrb.mxu0 %v3723_v8  ;;  %v563_v25 = vpack.c.bf16 %v275_v14, %v259_v12  ;;  %v3730_v12 = vld [vmem:[#allocation5 + $0x368] sm:$0xff] }
 0x16b   : > { %2138 = vmatmul.bf16.gmra.mxu2 %v688_v15  ;;  %v260_v15 = vld [vmem:[%s4188_s29 + $0x50] sm:$0xff]  ;;  %2613 = vmatpush.bf16.msrb.mxu3 %v3747_v9 }
 0x16c   : > { %2196 = vmatmul.bf16.gmra.mxu3 %v689_v16  ;;  %v276_v16 = vld [vmem:[%s4188_s29 + $0xd0] sm:$0xff]  ;;  %2497 = vmatpush.bf16.msrb.mxu1 %v3731_v10 }
 0x16e   : > { %v2099_v26 = vpop.f32.mrf.mxu2  ;;  %v1985_v29 = vpop.f32.mrf.mxu0 }
 0x16f   : > { %v2157_v27 = vpop.f32.mrf.mxu3  ;;  %v2100_v28 = vadd.f32 %v2099_v26, %v2042_v21  ;;  %v2043_v58 = vpop.f32.mrf.mxu1  ;;  %v1986_v33 = vadd.f32 %v1985_v29, %v4281_v11  ;;  %v277_v21 = vld [vmem:[%s4188_s29 + $0xd8] sm:$0xff]  ;;  %v564_v29 = vpack.c.bf16 %v276_v16, %v260_v15 }
 0x170   : > { %2498 = vmatpush.bf16.msrb.mxu1 %v3730_v12  ;;  %v357_v12 = vld [vmem:[%s4188_s29 + $0x358] sm:$0xff] }
 0x171   : > { %v4407_v34 = vadd.f32 %v2157_v27, %v2100_v28  ;;  %v2044_v36 = vadd.f32 %v2043_v58, %v1986_v33  ;;  %v565_v58 = vpack.c.bf16 %v277_v21, %v261_v20 }
 0x176   : > { %v2101_v42 = vpop.f32.mrf.mxu2  ;;  %v1988_v50 = vpop.f32.mrf.mxu0 }
 0x177   : > { %v2159_v43 = vpop.f32.mrf.mxu3  ;;  %v2102_v49 = vadd.f32 %v2101_v42, %v2044_v36  ;;  %v2046_v51 = vpop.f32.mrf.mxu1  ;;  %v1989_v11 = vadd.f32 %v1988_v50, %v4284_v19  ;;  %v3738_v50 = vld [vmem:[#allocation5 + $0x3a8] sm:$0xff] }
 0x178   : > { %2556 = vmatpush.bf16.msrb.mxu2 %v3738_v50 }
 0x179   : > { %v4414_v54 = vadd.f32 %v2159_v43, %v2102_v49  ;;  %v2047_v56 = vadd.f32 %v2046_v51, %v1989_v11  ;;  %2027 = vmatmul.bf16.gmra.mxu0 %v702_v47  ;;  %v290_v47 = vld [vmem:[%s4188_s29 + $0x140] sm:$0xff]  ;;  %v3722_v51 = vld [vmem:[#allocation5 + $0x328] sm:$0xff] }
 0x17a   : > { %2085 = vmatmul.bf16.gmra.mxu1 %v703_v48  ;;  %v306_v48 = vld [vmem:[%s4188_s29 + $0x1c0] sm:$0xff]  ;;  %v307_v11 = vld [vmem:[%s4188_s29 + $0x1c8] sm:$0xff]  ;;  %2440 = vmatpush.bf16.msrb.mxu0 %v3722_v51 }
 0x17b   : > { %2143 = vmatmul.bf16.gmra.mxu2 %v704_v32  ;;  %v3746_v32 = vld [vmem:[#allocation5 + $0x3e8] sm:$0xff]  ;;  %v3737_v51 = vld [vmem:[#allocation5 + $0x3a0] sm:$0xff] }
 0x17c   : > { %2201 = vmatmul.bf16.gmra.mxu3 %v705_v53  ;;  %v291_v53 = vld [vmem:[%s4188_s29 + $0x148] sm:$0xff]  ;;  %2557 = vmatpush.bf16.msrb.mxu2 %v3737_v51 }
 0x17d   : > { %2614 = vmatpush.bf16.msrb.mxu3 %v3746_v32  ;;  %v403_v51 = vld [vmem:[%s4188_s29 + $0x4c8] sm:$0xff] }
 0x17e   : > { %v2104_v57 = vpop.f32.mrf.mxu2  ;;  %v1990_v63 = vpop.f32.mrf.mxu0 }
 0x17f   : > { %v2162_v61 = vpop.f32.mrf.mxu3  ;;  %v2105_v62 = vadd.f32 %v2104_v57, %v2047_v56  ;;  %v2048_v0 = vpop.f32.mrf.mxu1  ;;  %v1991_v19 = vadd.f32 %v1990_v63, %v4295_v44  ;;  %v292_v56 = vld [vmem:[%s4188_s29 + $0x150] sm:$0xff] }
 0x180   : > { %v308_v57 = vld [vmem:[%s4188_s29 + $0x1d0] sm:$0xff] }
 0x181   : > { %v4417_v2 = vadd.f32 %v2162_v61, %v2105_v62  ;;  %v2049_v6 = vadd.f32 %v2048_v0, %v1991_v19  ;;  %v293_v61 = vld [vmem:[%s4188_s29 + $0x158] sm:$0xff]  ;;  %v579_v19 = vpack.c.bf16 %v307_v11, %v291_v53  ;;  %v3721_v53 = vld [vmem:[#allocation5 + $0x320] sm:$0xff] }
 0x182   : > { %v309_v62 = vld [vmem:[%s4188_s29 + $0x1d8] sm:$0xff]  ;;  %v3745_v11 = vld [vmem:[#allocation5 + $0x3e0] sm:$0xff]  ;;  %2441 = vmatpush.bf16.msrb.mxu0 %v3721_v53  ;;  %v404_v53 = vld [vmem:[%s4188_s29 + $0x4d0] sm:$0xff] }
 0x183   : > { %v581_v8 = vpack.c.bf16 %v309_v62, %v293_v61  ;;  %2615 = vmatpush.bf16.msrb.mxu3 %v3745_v11  ;;  %v389_v11 = vld [vmem:[%s4188_s29 + $0x458] sm:$0xff] }
 0x186   : > { %v2106_v44 = vpop.f32.mrf.mxu2  ;;  %v1993_v27 = vpop.f32.mrf.mxu0 }
 0x187   : > { %v2164_v22 = vpop.f32.mrf.mxu3  ;;  %v2107_v26 = vadd.f32 %v2106_v44, %v2049_v6  ;;  %v2051_v28 = vpop.f32.mrf.mxu1  ;;  %v1994_v33 = vadd.f32 %v1993_v27, %v4298_v52  ;;  %v580_v6 = vpack.c.bf16 %v308_v57, %v292_v56  ;;  %v323_v27 = vld [vmem:[%s4188_s29 + $0x248] sm:$0xff]  ;;  %v3729_v56 = vld [vmem:[#allocation5 + $0x360] sm:$0xff] }
 0x188   : > { %2499 = vmatpush.bf16.msrb.mxu1 %v3729_v56  ;;  %v405_v56 = vld [vmem:[%s4188_s29 + $0x4d8] sm:$0xff] }
 0x189   : > { %v4428_v35 = vadd.f32 %v2164_v22, %v2107_v26  ;;  %v2052_v36 = vadd.f32 %v2051_v28, %v1994_v33  ;;  %2214 = vmatmul.bf16.vlgmr.msra.gmra.mxu0 %v562_v24  ;;  %v338_v26 = vld [vmem:[%s4188_s29 + $0x2c0] sm:$0xff]  ;;  %v339_v28 = vld [vmem:[%s4188_s29 + $0x2c8] sm:$0xff]  ;;  %v325_v33 = vld [vmem:[%s4188_s29 + $0x258] sm:$0xff] }
 0x18a   : > { %2272 = vmatmul.bf16.vlgmr.msra.gmra.mxu1 %v563_v25  ;;  %v322_v25 = vld [vmem:[%s4188_s29 + $0x240] sm:$0xff] }
 0x18b   : > { %2330 = vmatmul.bf16.vlgmr.msra.gmra.mxu2 %v564_v29  ;;  %v324_v29 = vld [vmem:[%s4188_s29 + $0x250] sm:$0xff] }
 0x18c   : > { %2388 = vmatmul.bf16.vlgmr.msra.gmra.mxu3 %v565_v58  ;;  %v340_v58 = vld [vmem:[%s4188_s29 + $0x2d0] sm:$0xff] }
 0x18e   : > { %v2109_v37 = vpop.f32.mrf.mxu2  ;;  %v1995_v41 = vpop.f32.mrf.mxu0 }
 0x18f   : > { %v2167_v38 = vpop.f32.mrf.mxu3  ;;  %v2110_v39 = vadd.f32 %v2109_v37, %v2052_v36  ;;  %v2053_v42 = vpop.f32.mrf.mxu1  ;;  %v1996_v52 = vadd.f32 %v1995_v41, %v4309_v13  ;;  %v578_v13 = vpack.c.bf16 %v306_v48, %v290_v47  ;;  %v341_v36 = vld [vmem:[%s4188_s29 + $0x2d8] sm:$0xff]  ;;  %v595_v41 = vpack.c.bf16 %v339_v28, %v323_v27 }
 0x190   : > { %v596_v48 = vpack.c.bf16 %v340_v58, %v324_v29  ;;  %v3736_v29 = vld [vmem:[#allocation5 + $0x398] sm:$0xff] }
 0x191   : > { %v4431_v43 = vadd.f32 %v2167_v38, %v2110_v39  ;;  %v2054_v49 = vadd.f32 %v2053_v42, %v1996_v52  ;;  %v594_v39 = vpack.c.bf16 %v338_v26, %v322_v25  ;;  %v3720_v58 = vld [vmem:[#allocation5 + $0x318] sm:$0xff]  ;;  %2558 = vmatpush.bf16.msrb.mxu2 %v3736_v29  ;;  %v420_v29 = vld [vmem:[%s4188_s29 + $0x550] sm:$0xff] }
 0x192   : > { %2442 = vmatpush.bf16.msrb.mxu0 %v3720_v58  ;;  %v436_v58 = vld [vmem:[%s4188_s29 + $0x5d0] sm:$0xff] }
 0x196   : > { %v2111_v63 = vpop.f32.mrf.mxu2  ;;  %v1998_v4 = vpop.f32.mrf.mxu0 }
 0x197   : > { %v2169_v0 = vpop.f32.mrf.mxu3  ;;  %v2112_v3 = vadd.f32 %v2111_v63, %v2054_v49  ;;  %v2056_v5 = vpop.f32.mrf.mxu1  ;;  %v1999_v9 = vadd.f32 %v1998_v4, %v4312_v23  ;;  %v370_v4 = vld [vmem:[%s4188_s29 + $0x3c0] sm:$0xff] }
 0x199   : > { %v4442_v10 = vadd.f32 %v2169_v0, %v2112_v3  ;;  %v2057_v14 = vadd.f32 %v2056_v5, %v1999_v9  ;;  %2219 = vmatmul.bf16.gmra.mxu0 %v578_v13  ;;  %v354_v3 = vld [vmem:[%s4188_s29 + $0x340] sm:$0xff]  ;;  %v355_v5 = vld [vmem:[%s4188_s29 + $0x348] sm:$0xff]  ;;  %v372_v9 = vld [vmem:[%s4188_s29 + $0x3d0] sm:$0xff] }
 0x19a   : > { %2277 = vmatmul.bf16.gmra.mxu1 %v579_v19 }
 0x19b   : > { %2335 = vmatmul.bf16.gmra.mxu2 %v580_v6  ;;  %v371_v6 = vld [vmem:[%s4188_s29 + $0x3c8] sm:$0xff] }
 0x19c   : > { %2393 = vmatmul.bf16.gmra.mxu3 %v581_v8  ;;  %v356_v8 = vld [vmem:[%s4188_s29 + $0x350] sm:$0xff] }
 0x19d   : > { %v612_v25 = vpack.c.bf16 %v372_v9, %v356_v8 }
 0x19e   : > { %v2114_v15 = vpop.f32.mrf.mxu2  ;;  %v2000_v20 = vpop.f32.mrf.mxu0 }
 0x19f   : > { %v2172_v16 = vpop.f32.mrf.mxu3  ;;  %v2115_v23 = vadd.f32 %v2114_v15, %v2057_v14  ;;  %v2058_v21 = vpop.f32.mrf.mxu1  ;;  %v2001_v44 = vadd.f32 %v2000_v20, %v4323_v45  ;;  %v597_v45 = vpack.c.bf16 %v341_v36, %v325_v33  ;;  %v373_v14 = vld [vmem:[%s4188_s29 + $0x3d8] sm:$0xff]  ;;  %v611_v20 = vpack.c.bf16 %v371_v6, %v355_v5 }
 0x1a0   : > { %v3744_v33 = vld [vmem:[#allocation5 + $0x3d8] sm:$0xff] }
 0x1a1   : > { %v4445_v22 = vadd.f32 %v2172_v16, %v2115_v23  ;;  %v2059_v24 = vadd.f32 %v2058_v21, %v2001_v44  ;;  %v610_v23 = vpack.c.bf16 %v370_v4, %v354_v3  ;;  %2616 = vmatpush.bf16.msrb.mxu3 %v3744_v33  ;;  %v629_v3 = vpack.c.bf16 %v405_v56, %v389_v11  ;;  %v421_v33 = vld [vmem:[%s4188_s29 + $0x558] sm:$0xff] }
 0x1a6   : > { %v2116_v37 = vpop.f32.mrf.mxu2  ;;  %v2003_v52 = vpop.f32.mrf.mxu0 }
 0x1a7   : > { %v2174_v38 = vpop.f32.mrf.mxu3  ;;  %v2117_v42 = vadd.f32 %v2116_v37, %v2059_v24  ;;  %v2061_v47 = vpop.f32.mrf.mxu1  ;;  %v2004_v49 = vadd.f32 %v2003_v52, %v4326_v59  ;;  %v3728_v52 = vld [vmem:[#allocation5 + $0x358] sm:$0xff] }
 0x1a8   : > { %2500 = vmatpush.bf16.msrb.mxu1 %v3728_v52 }
 0x1a9   : > { %v4456_v50 = vadd.f32 %v2174_v38, %v2117_v42  ;;  %v2062_v32 = vadd.f32 %v2061_v47, %v2004_v49  ;;  %2224 = vmatmul.bf16.gmra.mxu0 %v594_v39  ;;  %v387_v49 = vld [vmem:[%s4188_s29 + $0x448] sm:$0xff] }
 0x1aa   : > { %2282 = vmatmul.bf16.gmra.mxu1 %v595_v41 }
 0x1ab   : > { %2340 = vmatmul.bf16.gmra.mxu2 %v596_v48  ;;  %v386_v48 = vld [vmem:[%s4188_s29 + $0x440] sm:$0xff] }
 0x1ac   : > { %2398 = vmatmul.bf16.gmra.mxu3 %v597_v45  ;;  %v402_v45 = vld [vmem:[%s4188_s29 + $0x4c0] sm:$0xff] }
 0x1ae   : > { %v2119_v59 = vpop.f32.mrf.mxu2  ;;  %v2005_v62 = vpop.f32.mrf.mxu0 }
 0x1af   : > { %v2177_v57 = vpop.f32.mrf.mxu3  ;;  %v2120_v61 = vadd.f32 %v2119_v59, %v2062_v32  ;;  %v2063_v63 = vpop.f32.mrf.mxu1  ;;  %v2006_v0 = vadd.f32 %v2005_v62, %v4337_v17  ;;  %v613_v17 = vpack.c.bf16 %v373_v14, %v357_v12  ;;  %v388_v32 = vld [vmem:[%s4188_s29 + $0x450] sm:$0xff]  ;;  %v627_v62 = vpack.c.bf16 %v403_v51, %v387_v49 }
 0x1b1   : > { %v4459_v13 = vadd.f32 %v2177_v57, %v2120_v61  ;;  %v2064_v19 = vadd.f32 %v2063_v63, %v2006_v0  ;;  %v626_v61 = vpack.c.bf16 %v402_v45, %v386_v48 }
 0x1b6   : > { %v2121_v15 = vpop.f32.mrf.mxu2  ;;  %v2008_v44 = vpop.f32.mrf.mxu0 }
 0x1b7   : > { %v2179_v16 = vpop.f32.mrf.mxu3  ;;  %v2122_v21 = vadd.f32 %v2121_v15, %v2064_v19  ;;  %v2066_v24 = vpop.f32.mrf.mxu1  ;;  %v2009_v26 = vadd.f32 %v2008_v44, %v4340_v30  ;;  %v628_v19 = vpack.c.bf16 %v404_v53, %v388_v32 }
 0x1b9   : > { %v4470_v27 = vadd.f32 %v2179_v16, %v2122_v21  ;;  %v2067_v28 = vadd.f32 %v2066_v24, %v2009_v26  ;;  %2229 = vmatmul.bf16.gmra.mxu0 %v610_v23  ;;  %v418_v23 = vld [vmem:[%s4188_s29 + $0x540] sm:$0xff]  ;;  %v3735_v21 = vld [vmem:[#allocation5 + $0x390] sm:$0xff]  ;;  %v419_v26 = vld [vmem:[%s4188_s29 + $0x548] sm:$0xff] }
 0x1ba   : > { %2287 = vmatmul.bf16.gmra.mxu1 %v611_v20  ;;  %v434_v20 = vld [vmem:[%s4188_s29 + $0x5c0] sm:$0xff]  ;;  %v3719_v24 = vld [vmem:[#allocation5 + $0x310] sm:$0xff]  ;;  %2559 = vmatpush.bf16.msrb.mxu2 %v3735_v21 }
 0x1bb   : > { %2345 = vmatmul.bf16.gmra.mxu2 %v612_v25  ;;  %v3743_v25 = vld [vmem:[#allocation5 + $0x3d0] sm:$0xff]  ;;  %2443 = vmatpush.bf16.msrb.mxu0 %v3719_v24 }
 0x1bc   : > { %2403 = vmatmul.bf16.gmra.mxu3 %v613_v17  ;;  %v3727_v17 = vld [vmem:[#allocation5 + $0x350] sm:$0xff] }
 0x1bd   : > { %2617 = vmatpush.bf16.msrb.mxu3 %v3743_v25  ;;  %2501 = vmatpush.bf16.msrb.mxu1 %v3727_v17 }
 0x1be   : > { %v2124_v36 = vpop.f32.mrf.mxu2  ;;  %v2010_v38 = vpop.f32.mrf.mxu0 }
 0x1bf   : > { %v2182_v30 = vpop.f32.mrf.mxu3  ;;  %v2125_v37 = vadd.f32 %v2124_v36, %v2067_v28  ;;  %v2068_v39 = vpop.f32.mrf.mxu1  ;;  %v2011_v41 = vadd.f32 %v2010_v38, %v4351_v55  ;;  %v435_v28 = vld [vmem:[%s4188_s29 + $0x5c8] sm:$0xff]  ;;  %v437_v36 = vld [vmem:[%s4188_s29 + $0x5d8] sm:$0xff] }
 0x1c0   : > { %v643_v38 = vpack.c.bf16 %v435_v28, %v419_v26  ;;  %v645_v48 = vpack.c.bf16 %v437_v36, %v421_v33 }
 0x1c1   : > { %v4473_v42 = vadd.f32 %v2182_v30, %v2125_v37  ;;  %v2069_v47 = vadd.f32 %v2068_v39, %v2011_v41  ;;  %v642_v37 = vpack.c.bf16 %v434_v20, %v418_v23  ;;  %v3726_v23 = vld [vmem:[#allocation5 + $0x348] sm:$0xff] }
 0x1c2   : > { %2502 = vmatpush.bf16.msrb.mxu1 %v3726_v23  ;;  %v515_v23 = vld [vmem:[%s4188_s29 + $0x848] sm:$0xff] }
 0x1c6   : > { %v2126_v59 = vpop.f32.mrf.mxu2  ;;  %v2013_v0 = vpop.f32.mrf.mxu0 }
 0x1c7   : > { %v2184_v57 = vpop.f32.mrf.mxu3  ;;  %v2127_v63 = vadd.f32 %v2126_v59, %v2069_v47  ;;  %v2071_v55 = vpop.f32.mrf.mxu1  ;;  %v2014_v4 = vadd.f32 %v2013_v0, %v4354_v1  ;;  %v644_v47 = vpack.c.bf16 %v436_v58, %v420_v29 }
 0x1c9   : > { %v4484_v5 = vadd.f32 %v2184_v57, %v2127_v63  ;;  %v2072_v6 = vadd.f32 %v2071_v55, %v2014_v4  ;;  %2234 = vmatmul.bf16.gmra.mxu0 %v626_v61  ;;  %v3734_v61 = vld [vmem:[#allocation5 + $0x388] sm:$0xff]  ;;  %v450_v55 = vld [vmem:[%s4188_s29 + $0x640] sm:$0xff] }
 0x1ca   : > { %2292 = vmatmul.bf16.gmra.mxu1 %v627_v62  ;;  %v3718_v62 = vld [vmem:[#allocation5 + $0x308] sm:$0xff]  ;;  %2560 = vmatpush.bf16.msrb.mxu2 %v3734_v61 }
 0x1cb   : > { %2350 = vmatmul.bf16.gmra.mxu2 %v628_v19  ;;  %v3742_v63 = vld [vmem:[#allocation5 + $0x3c8] sm:$0xff]  ;;  %v466_v19 = vld [vmem:[%s4188_s29 + $0x6c0] sm:$0xff]  ;;  %2444 = vmatpush.bf16.msrb.mxu0 %v3718_v62 }
 0x1cc   : > { %2408 = vmatmul.bf16.gmra.mxu3 %v629_v3  ;;  %v451_v3 = vld [vmem:[%s4188_s29 + $0x648] sm:$0xff] }
 0x1cd   : > { %v467_v4 = vld [vmem:[%s4188_s29 + $0x6c8] sm:$0xff]  ;;  %2618 = vmatpush.bf16.msrb.mxu3 %v3742_v63 }
 0x1ce   : > { %v2129_v8 = vpop.f32.mrf.mxu2  ;;  %v2015_v14 = vpop.f32.mrf.mxu0 }
 0x1cf   : > { %v2187_v9 = vpop.f32.mrf.mxu3  ;;  %v2130_v12 = vadd.f32 %v2129_v8, %v2072_v6  ;;  %v2073_v15 = vpop.f32.mrf.mxu1  ;;  %v2016_v1 = vadd.f32 %v2015_v14, %v4365_v31  ;;  %v452_v6 = vld [vmem:[%s4188_s29 + $0x650] sm:$0xff] }
 0x1d0   : > { %v468_v8 = vld [vmem:[%s4188_s29 + $0x6d0] sm:$0xff] }
 0x1d1   : > { %v4487_v16 = vadd.f32 %v2187_v9, %v2130_v12  ;;  %v2074_v44 = vadd.f32 %v2073_v15, %v2016_v1  ;;  %v453_v9 = vld [vmem:[%s4188_s29 + $0x658] sm:$0xff]  ;;  %v659_v1 = vpack.c.bf16 %v467_v4, %v451_v3  ;;  %v660_v24 = vpack.c.bf16 %v468_v8, %v452_v6  ;;  %v3717_v3 = vld [vmem:[#allocation5 + $0x300] sm:$0xff] }
 0x1d2   : > { %v469_v12 = vld [vmem:[%s4188_s29 + $0x6d8] sm:$0xff]  ;;  %v3741_v4 = vld [vmem:[#allocation5 + $0x3c0] sm:$0xff]  ;;  %2445 = vmatpush.bf16.msrb.mxu0 %v3717_v3 }
 0x1d3   : > { %v661_v25 = vpack.c.bf16 %v469_v12, %v453_v9  ;;  %v3725_v6 = vld [vmem:[#allocation5 + $0x340] sm:$0xff]  ;;  %2619 = vmatpush.bf16.msrb.mxu3 %v3741_v4 }
 0x1d4   : > { %2503 = vmatpush.bf16.msrb.mxu1 %v3725_v6 }
 0x1d6   : > { %v2131_v31 = vpop.f32.mrf.mxu2  ;;  %v2018_v41 = vpop.f32.mrf.mxu0 }
 0x1d7   : > { %v2189_v30 = vpop.f32.mrf.mxu3  ;;  %v2132_v39 = vadd.f32 %v2131_v31, %v2074_v44  ;;  %v2076_v52 = vpop.f32.mrf.mxu1  ;;  %v2019_v45 = vadd.f32 %v2018_v41, %v4368_v40  ;;  %v483_v41 = vld [vmem:[%s4188_s29 + $0x748] sm:$0xff] }
 0x1d9   : > { %v4498_v49 = vadd.f32 %v2189_v30, %v2132_v39  ;;  %v2077_v51 = vadd.f32 %v2076_v52, %v2019_v45  ;;  %2239 = vmatmul.bf16.gmra.mxu0 %v642_v37  ;;  %v498_v39 = vld [vmem:[%s4188_s29 + $0x7c0] sm:$0xff]  ;;  %v499_v52 = vld [vmem:[%s4188_s29 + $0x7c8] sm:$0xff]  ;;  %v485_v45 = vld [vmem:[%s4188_s29 + $0x758] sm:$0xff] }
 0x1da   : > { %2297 = vmatmul.bf16.gmra.mxu1 %v643_v38  ;;  %v482_v38 = vld [vmem:[%s4188_s29 + $0x740] sm:$0xff] }
 0x1db   : > { %2355 = vmatmul.bf16.gmra.mxu2 %v644_v47  ;;  %v484_v47 = vld [vmem:[%s4188_s29 + $0x750] sm:$0xff] }
 0x1dc   : > { %2413 = vmatmul.bf16.gmra.mxu3 %v645_v48  ;;  %v500_v48 = vld [vmem:[%s4188_s29 + $0x7d0] sm:$0xff] }
 0x1dd   : > { %v676_v62 = vpack.c.bf16 %v500_v48, %v484_v47 }
 0x1de   : > { %v2134_v32 = vpop.f32.mrf.mxu2  ;;  %v2020_v56 = vpop.f32.mrf.mxu0 }
 0x1df   : > { %v2192_v53 = vpop.f32.mrf.mxu3  ;;  %v2135_v11 = vadd.f32 %v2134_v32, %v2077_v51  ;;  %v2078_v59 = vpop.f32.mrf.mxu1  ;;  %v2021_v40 = vadd.f32 %v2020_v56, %v4379_v7  ;;  %v658_v7 = vpack.c.bf16 %v466_v19, %v450_v55  ;;  %v501_v51 = vld [vmem:[%s4188_s29 + $0x7d8] sm:$0xff]  ;;  %v675_v56 = vpack.c.bf16 %v499_v52, %v483_v41  ;;  %v3733_v55 = vld [vmem:[#allocation5 + $0x380] sm:$0xff] }
 0x1e0   : > { %2561 = vmatpush.bf16.msrb.mxu2 %v3733_v55 }
 0x1e1   : > { %v4501_v57 = vadd.f32 %v2192_v53, %v2135_v11  ;;  %v2079_v0 = vadd.f32 %v2078_v59, %v2021_v40  ;;  %v674_v11 = vpack.c.bf16 %v498_v39, %v482_v38 }
 0x1e6   : > { %v2136_v14 = vpop.f32.mrf.mxu2  ;;  %v2023_v21 = vpop.f32.mrf.mxu0 }
 0x1e7   : > { %v2194_v15 = vpop.f32.mrf.mxu3  ;;  %v2137_v20 = vadd.f32 %v2136_v14, %v2079_v0  ;;  %v2081_v44 = vpop.f32.mrf.mxu1  ;;  %v2024_v17 = vadd.f32 %v2023_v21, %v4382_v18  ;;  %v516_v21 = vld [vmem:[%s4188_s29 + $0x850] sm:$0xff] }
 0x1e9   : > { %v4512_v26 = vadd.f32 %v2194_v15, %v2137_v20  ;;  %v2082_v28 = vadd.f32 %v2081_v44, %v2024_v17  ;;  %2244 = vmatmul.bf16.gmra.mxu0 %v658_v7  ;;  %v514_v7 = vld [vmem:[%s4188_s29 + $0x840] sm:$0xff]  ;;  %v531_v20 = vld [vmem:[%s4188_s29 + $0x8c8] sm:$0xff]  ;;  %v532_v44 = vld [vmem:[%s4188_s29 + $0x8d0] sm:$0xff] }
 0x1ea   : > { %2302 = vmatmul.bf16.gmra.mxu1 %v659_v1  ;;  %v530_v1 = vld [vmem:[%s4188_s29 + $0x8c0] sm:$0xff] }
 0x1eb   : > { %2360 = vmatmul.bf16.gmra.mxu2 %v660_v24  ;;  %v517_v24 = vld [vmem:[%s4188_s29 + $0x858] sm:$0xff] }
 0x1ec   : > { %2418 = vmatmul.bf16.gmra.mxu3 %v661_v25  ;;  %v533_v25 = vld [vmem:[%s4188_s29 + $0x8d8] sm:$0xff] }
 0x1ee   : > { %v2139_v29 = vpop.f32.mrf.mxu2  ;;  %v2025_v18 = vpop.f32.mrf.mxu0 }
 0x1ef   : > { %v2197_v58 = vpop.f32.mrf.mxu3  ;;  %v2140_v33 = vadd.f32 %v2139_v29, %v2082_v28  ;;  %v2083_v36 = vpop.f32.mrf.mxu1  ;;  %v2026_v31 = vadd.f32 %v2025_v18, %v4393_v46  ;;  %v677_v46 = vpack.c.bf16 %v501_v51, %v485_v45  ;;  %v690_v29 = vpack.c.bf16 %v530_v1, %v514_v7 }
 0x1f1   : > { %v4515_v30 = vadd.f32 %v2197_v58, %v2140_v33  ;;  %v2084_v37 = vadd.f32 %v2083_v36, %v2026_v31  ;;  %v691_v58 = vpack.c.bf16 %v531_v20, %v515_v23  ;;  %v692_v36 = vpack.c.bf16 %v532_v44, %v516_v21  ;;  %v262_v23 = vld [vmem:[%s4188_s29 + $0x60] sm:$0xff]  ;;  %v263_v21 = vld [vmem:[%s4188_s29 + $0x68] sm:$0xff] }
 0x1f2   : > { %v693_v31 = vpack.c.bf16 %v533_v25, %v517_v24  ;;  %v278_v20 = vld [vmem:[%s4188_s29 + $0xe0] sm:$0xff]  ;;  %v279_v44 = vld [vmem:[%s4188_s29 + $0xe8] sm:$0xff]  ;;  %v264_v24 = vld [vmem:[%s4188_s29 + $0x70] sm:$0xff] }
 0x1f3   : > { %v280_v25 = vld [vmem:[%s4188_s29 + $0xf0] sm:$0xff] }
 0x1f6   : > { %v2141_v32 = vpop.f32.mrf.mxu2  ;;  %v2028_v40 = vpop.f32.mrf.mxu0 }
 0x1f7   : > { %v2199_v53 = vpop.f32.mrf.mxu3  ;;  %v2142_v59 = vadd.f32 %v2141_v32, %v2084_v37  ;;  %v2086_v61 = vpop.f32.mrf.mxu1  ;;  %v2029_v63 = vadd.f32 %v2028_v40, %v4395_v60 }
 0x1f9   : > { %v4526_v0 = vadd.f32 %v2199_v53, %v2142_v59  ;;  %v2087_v19 = vadd.f32 %v2086_v61, %v2029_v63  ;;  %2249 = vmatmul.bf16.gmra.mxu0 %v674_v11  ;;  %v546_v53 = vld [vmem:[%s4188_s29 + $0x940] sm:$0xff]  ;;  %v547_v11 = vld [vmem:[%s4188_s29 + $0x948] sm:$0xff] }
 0x1fa   : > { %2307 = vmatmul.bf16.gmra.mxu1 %v675_v56  ;;  %v549_v56 = vld [vmem:[%s4188_s29 + $0x958] sm:$0xff]  ;;  %v706_v61 = vpack.c.bf16 %v546_v53, %v546_v53 }
 0x1fb   : > { %2365 = vmatmul.bf16.gmra.mxu2 %v676_v62  ;;  %v707_v62 = vpack.c.bf16 %v547_v11, %v547_v11  ;;  %v709_v3 = vpack.c.bf16 %v549_v56, %v549_v56  ;;  %v294_v56 = vld [vmem:[%s4188_s29 + $0x160] sm:$0xff] }
 0x1fc   : > { %2423 = vmatmul.bf16.gmra.mxu3 %v677_v46 }
 0x1fe   : > { %v2144_v60 = vpop.f32.mrf.mxu2  ;;  %v2030_v12 = vpop.f32.mrf.mxu0 }
 0x1ff   : > { %v2202_v8 = vpop.f32.mrf.mxu3  ;;  %v2145_v9 = vadd.f32 %v2144_v60, %v2087_v19  ;;  %v2088_v14 = vpop.f32.mrf.mxu1 }
 0x201   : > { %v4528_v15 = vadd.f32 %v2202_v8, %v2145_v9 }
 0x206   : > { %v2146_v17 = vpop.f32.mrf.mxu2  ;;  %v2215_v33 = vpop.f32.mrf.mxu0 }
 0x207   : > { %v2204_v28 = vpop.f32.mrf.mxu3  ;;  %v2273_v18 = vpop.f32.mrf.mxu1  ;;  %v2216_v37 = vadd.f32 %v2215_v33, %v4407_v34  ;;  %v548_v34 = vld [vmem:[%s4188_s29 + $0x950] sm:$0xff]  ;;  %v265_v17 = vld [vmem:[%s4188_s29 + $0x78] sm:$0xff]  ;;  %v566_v33 = vpack.c.bf16 %v278_v20, %v262_v23 }
 0x208   : > { %v708_v19 = vpack.c.bf16 %v548_v34, %v548_v34  ;;  %v281_v28 = vld [vmem:[%s4188_s29 + $0xf8] sm:$0xff] }
 0x209   : > { %v2274_v38 = vadd.f32 %v2273_v18, %v2216_v37  ;;  %2254 = vmatmul.bf16.gmra.mxu0 %v690_v29  ;;  %v567_v18 = vpack.c.bf16 %v279_v44, %v263_v21 }
 0x20a   : > { %2312 = vmatmul.bf16.gmra.mxu1 %v691_v58 }
 0x20b   : > { %2370 = vmatmul.bf16.gmra.mxu2 %v692_v36 }
 0x20c   : > { %2428 = vmatmul.bf16.gmra.mxu3 %v693_v31 }
 0x20e   : > { %v2331_v39 = vpop.f32.mrf.mxu2  ;;  %v2217_v47 = vpop.f32.mrf.mxu0 }
 0x20f   : > { %v2389_v41 = vpop.f32.mrf.mxu3  ;;  %v2332_v52 = vadd.f32 %v2331_v39, %v2274_v38  ;;  %v2275_v48 = vpop.f32.mrf.mxu1  ;;  %v2218_v45 = vadd.f32 %v2217_v47, %v4414_v54  ;;  %v568_v38 = vpack.c.bf16 %v280_v25, %v264_v24 }
 0x211   : > { %v4540_v51 = vadd.f32 %v2389_v41, %v2332_v52  ;;  %v2276_v32 = vadd.f32 %v2275_v48, %v2218_v45 }
 0x216   : > { %v2333_v59 = vpop.f32.mrf.mxu2  ;;  %v2220_v63 = vpop.f32.mrf.mxu0 }
 0x217   : > { %v2391_v40 = vpop.f32.mrf.mxu3  ;;  %v2334_v46 = vadd.f32 %v2333_v59, %v2276_v32  ;;  %v2278_v55 = vpop.f32.mrf.mxu1  ;;  %v2221_v4 = vadd.f32 %v2220_v63, %v4417_v2  ;;  %v310_v59 = vld [vmem:[%s4188_s29 + $0x1e0] sm:$0xff]  ;;  %v297_v63 = vld [vmem:[%s4188_s29 + $0x178] sm:$0xff] }
 0x219   : > { %v4547_v54 = vadd.f32 %v2391_v40, %v2334_v46  ;;  %v2279_v6 = vadd.f32 %v2278_v55, %v2221_v4  ;;  %2259 = vmatmul.bf16.gmra.mxu0 %v706_v61  ;;  %v295_v40 = vld [vmem:[%s4188_s29 + $0x168] sm:$0xff]  ;;  %v312_v46 = vld [vmem:[%s4188_s29 + $0x1f0] sm:$0xff]  ;;  %v313_v55 = vld [vmem:[%s4188_s29 + $0x1f8] sm:$0xff]  ;;  %v582_v4 = vpack.c.bf16 %v310_v59, %v294_v56 }
 0x21a   : > { %2317 = vmatmul.bf16.gmra.mxu1 %v707_v62  ;;  %v311_v61 = vld [vmem:[%s4188_s29 + $0x1e8] sm:$0xff]  ;;  %v296_v62 = vld [vmem:[%s4188_s29 + $0x170] sm:$0xff] }
 0x21b   : > { %2375 = vmatmul.bf16.gmra.mxu2 %v708_v19 }
 0x21c   : > { %2433 = vmatmul.bf16.gmra.mxu3 %v709_v3 }
 0x21e   : > { %v2336_v60 = vpop.f32.mrf.mxu2  ;;  %v2222_v12 = vpop.f32.mrf.mxu0 }
 0x21f   : > { %v2394_v8 = vpop.f32.mrf.mxu3  ;;  %v2337_v9 = vadd.f32 %v2336_v60, %v2279_v6  ;;  %v2280_v14 = vpop.f32.mrf.mxu1  ;;  %v2223_v2 = vadd.f32 %v2222_v12, %v4428_v35  ;;  %v569_v35 = vpack.c.bf16 %v281_v28, %v265_v17  ;;  %v583_v6 = vpack.c.bf16 %v311_v61, %v295_v40  ;;  %v326_v28 = vld [vmem:[%s4188_s29 + $0x260] sm:$0xff] }
 0x220   : > { %v584_v12 = vpack.c.bf16 %v312_v46, %v296_v62 }
 0x221   : > { %v4550_v7 = vadd.f32 %v2394_v8, %v2337_v9  ;;  %v2281_v1 = vadd.f32 %v2280_v14, %v2223_v2 }
 0x226   : > { %v2338_v29 = vpop.f32.mrf.mxu2  ;;  %v2225_v31 = vpop.f32.mrf.mxu0 }
 0x227   : > { %v2396_v58 = vpop.f32.mrf.mxu3  ;;  %v2339_v36 = vadd.f32 %v2338_v29, %v2281_v1  ;;  %v2283_v37 = vpop.f32.mrf.mxu1  ;;  %v2226_v39 = vadd.f32 %v2225_v31, %v4431_v43  ;;  %v342_v29 = vld [vmem:[%s4188_s29 + $0x2e0] sm:$0xff]  ;;  %v329_v31 = vld [vmem:[%s4188_s29 + $0x278] sm:$0xff] }
 0x229   : > { %v4561_v41 = vadd.f32 %v2396_v58, %v2339_v36  ;;  %v2284_v52 = vadd.f32 %v2283_v37, %v2226_v39  ;;  %2446 = vmatmul.bf16.vlgmr.msrb.gmra.mxu0 %v566_v33  ;;  %v327_v58 = vld [vmem:[%s4188_s29 + $0x268] sm:$0xff]  ;;  %v344_v36 = vld [vmem:[%s4188_s29 + $0x2f0] sm:$0xff]  ;;  %v345_v37 = vld [vmem:[%s4188_s29 + $0x2f8] sm:$0xff]  ;;  %v598_v39 = vpack.c.bf16 %v342_v29, %v326_v28 }
 0x22a   : > { %2504 = vmatmul.bf16.vlgmr.msrb.gmra.mxu1 %v567_v18  ;;  %v343_v33 = vld [vmem:[%s4188_s29 + $0x2e8] sm:$0xff]  ;;  %v328_v18 = vld [vmem:[%s4188_s29 + $0x270] sm:$0xff] }
 0x22b   : > { %2562 = vmatmul.bf16.vlgmr.msrb.gmra.mxu2 %v568_v38 }
 0x22c   : > { %2620 = vmatmul.bf16.vlgmr.msrb.gmra.mxu3 %v569_v35 }
 0x22e   : > { %v2341_v47 = vpop.f32.mrf.mxu2  ;;  %v2227_v32 = vpop.f32.mrf.mxu0 }
 0x22f   : > { %v2399_v48 = vpop.f32.mrf.mxu3  ;;  %v2342_v45 = vadd.f32 %v2341_v47, %v2284_v52  ;;  %v2285_v53 = vpop.f32.mrf.mxu1  ;;  %v2228_v43 = vadd.f32 %v2227_v32, %v4442_v10  ;;  %v585_v10 = vpack.c.bf16 %v313_v55, %v297_v63  ;;  %v599_v52 = vpack.c.bf16 %v343_v33, %v327_v58  ;;  %v358_v55 = vld [vmem:[%s4188_s29 + $0x360] sm:$0xff] }
 0x230   : > { %v600_v32 = vpack.c.bf16 %v344_v36, %v328_v18 }
 0x231   : > { %v4564_v11 = vadd.f32 %v2399_v48, %v2342_v45  ;;  %v2286_v34 = vadd.f32 %v2285_v53, %v2228_v43 }
 0x236   : > { %v2343_v19 = vpop.f32.mrf.mxu2  ;;  %v2230_v8 = vpop.f32.mrf.mxu0 }
 0x237   : > { %v2401_v3 = vpop.f32.mrf.mxu3  ;;  %v2344_v60 = vadd.f32 %v2343_v19, %v2286_v34  ;;  %v2288_v9 = vpop.f32.mrf.mxu1  ;;  %v2231_v14 = vadd.f32 %v2230_v8, %v4445_v22  ;;  %v374_v19 = vld [vmem:[%s4188_s29 + $0x3e0] sm:$0xff]  ;;  %v361_v8 = vld [vmem:[%s4188_s29 + $0x378] sm:$0xff] }
 0x239   : > { %v4575_v2 = vadd.f32 %v2401_v3, %v2344_v60  ;;  %v2289_v1 = vadd.f32 %v2288_v9, %v2231_v14  ;;  %2451 = vmatmul.bf16.gmra.mxu0 %v582_v4  ;;  %v359_v3 = vld [vmem:[%s4188_s29 + $0x368] sm:$0xff]  ;;  %v376_v60 = vld [vmem:[%s4188_s29 + $0x3f0] sm:$0xff]  ;;  %v377_v9 = vld [vmem:[%s4188_s29 + $0x3f8] sm:$0xff]  ;;  %v614_v14 = vpack.c.bf16 %v374_v19, %v358_v55 }
 0x23a   : > { %2509 = vmatmul.bf16.gmra.mxu1 %v583_v6  ;;  %v375_v4 = vld [vmem:[%s4188_s29 + $0x3e8] sm:$0xff]  ;;  %v360_v6 = vld [vmem:[%s4188_s29 + $0x370] sm:$0xff] }
 0x23b   : > { %2567 = vmatmul.bf16.gmra.mxu2 %v584_v12 }
 0x23c   : > { %2625 = vmatmul.bf16.gmra.mxu3 %v585_v10 }
 0x23e   : > { %v2346_v23 = vpop.f32.mrf.mxu2  ;;  %v2232_v44 = vpop.f32.mrf.mxu0 }
 0x23f   : > { %v2404_v20 = vpop.f32.mrf.mxu3  ;;  %v2347_v21 = vadd.f32 %v2346_v23, %v2289_v1  ;;  %v2290_v24 = vpop.f32.mrf.mxu1  ;;  %v2233_v22 = vadd.f32 %v2232_v44, %v4456_v50  ;;  %v601_v50 = vpack.c.bf16 %v345_v37, %v329_v31  ;;  %v615_v1 = vpack.c.bf16 %v375_v4, %v359_v3  ;;  %v390_v37 = vld [vmem:[%s4188_s29 + $0x460] sm:$0xff] }
 0x240   : > { %v616_v44 = vpack.c.bf16 %v376_v60, %v360_v6 }
 0x241   : > { %v4578_v25 = vadd.f32 %v2404_v20, %v2347_v21  ;;  %v2291_v17 = vadd.f32 %v2290_v24, %v2233_v22 }
 0x246   : > { %v2348_v38 = vpop.f32.mrf.mxu2  ;;  %v2235_v48 = vpop.f32.mrf.mxu0 }
 0x247   : > { %v2406_v35 = vpop.f32.mrf.mxu3  ;;  %v2349_v47 = vadd.f32 %v2348_v38, %v2291_v17  ;;  %v2293_v45 = vpop.f32.mrf.mxu1  ;;  %v2236_v53 = vadd.f32 %v2235_v48, %v4459_v13  ;;  %v406_v38 = vld [vmem:[%s4188_s29 + $0x4e0] sm:$0xff]  ;;  %v393_v48 = vld [vmem:[%s4188_s29 + $0x478] sm:$0xff] }
 0x249   : > { %v4589_v43 = vadd.f32 %v2406_v35, %v2349_v47  ;;  %v2294_v34 = vadd.f32 %v2293_v45, %v2236_v53  ;;  %2456 = vmatmul.bf16.gmra.mxu0 %v598_v39  ;;  %v391_v35 = vld [vmem:[%s4188_s29 + $0x468] sm:$0xff]  ;;  %v408_v47 = vld [vmem:[%s4188_s29 + $0x4f0] sm:$0xff]  ;;  %v409_v45 = vld [vmem:[%s4188_s29 + $0x4f8] sm:$0xff]  ;;  %v630_v53 = vpack.c.bf16 %v406_v38, %v390_v37 }
 0x24a   : > { %2514 = vmatmul.bf16.gmra.mxu1 %v599_v52  ;;  %v407_v39 = vld [vmem:[%s4188_s29 + $0x4e8] sm:$0xff]  ;;  %v392_v52 = vld [vmem:[%s4188_s29 + $0x470] sm:$0xff] }
 0x24b   : > { %2572 = vmatmul.bf16.gmra.mxu2 %v600_v32 }
 0x24c   : > { %2630 = vmatmul.bf16.gmra.mxu3 %v601_v50 }
 0x24e   : > { %v2351_v56 = vpop.f32.mrf.mxu2  ;;  %v2237_v61 = vpop.f32.mrf.mxu0 }
 0x24f   : > { %v2409_v59 = vpop.f32.mrf.mxu3  ;;  %v2352_v40 = vadd.f32 %v2351_v56, %v2294_v34  ;;  %v2295_v62 = vpop.f32.mrf.mxu1  ;;  %v2238_v13 = vadd.f32 %v2237_v61, %v4470_v27  ;;  %v617_v27 = vpack.c.bf16 %v377_v9, %v361_v8  ;;  %v631_v34 = vpack.c.bf16 %v407_v39, %v391_v35  ;;  %v422_v9 = vld [vmem:[%s4188_s29 + $0x560] sm:$0xff] }
 0x250   : > { %v632_v61 = vpack.c.bf16 %v408_v47, %v392_v52 }
 0x251   : > { %v4592_v46 = vadd.f32 %v2409_v59, %v2352_v40  ;;  %v2296_v63 = vadd.f32 %v2295_v62, %v2238_v13 }
 0x256   : > { %v2353_v12 = vpop.f32.mrf.mxu2  ;;  %v2240_v20 = vpop.f32.mrf.mxu0 }
 0x257   : > { %v2411_v10 = vpop.f32.mrf.mxu3  ;;  %v2354_v23 = vadd.f32 %v2353_v12, %v2296_v63  ;;  %v2298_v21 = vpop.f32.mrf.mxu1  ;;  %v2241_v24 = vadd.f32 %v2240_v20, %v4473_v42  ;;  %v438_v12 = vld [vmem:[%s4188_s29 + $0x5e0] sm:$0xff]  ;;  %v425_v20 = vld [vmem:[%s4188_s29 + $0x578] sm:$0xff] }
 0x259   : > { %v4603_v22 = vadd.f32 %v2411_v10, %v2354_v23  ;;  %v2299_v17 = vadd.f32 %v2298_v21, %v2241_v24  ;;  %2461 = vmatmul.bf16.gmra.mxu0 %v614_v14  ;;  %v423_v10 = vld [vmem:[%s4188_s29 + $0x568] sm:$0xff]  ;;  %v440_v23 = vld [vmem:[%s4188_s29 + $0x5f0] sm:$0xff]  ;;  %v441_v21 = vld [vmem:[%s4188_s29 + $0x5f8] sm:$0xff]  ;;  %v646_v24 = vpack.c.bf16 %v438_v12, %v422_v9 }
 0x25a   : > { %2519 = vmatmul.bf16.gmra.mxu1 %v615_v1  ;;  %v439_v14 = vld [vmem:[%s4188_s29 + $0x5e8] sm:$0xff]  ;;  %v424_v1 = vld [vmem:[%s4188_s29 + $0x570] sm:$0xff] }
 0x25b   : > { %2577 = vmatmul.bf16.gmra.mxu2 %v616_v44 }
 0x25c   : > { %2635 = vmatmul.bf16.gmra.mxu3 %v617_v27 }
 0x25e   : > { %v2356_v28 = vpop.f32.mrf.mxu2  ;;  %v2242_v33 = vpop.f32.mrf.mxu0 }
 0x25f   : > { %v2414_v29 = vpop.f32.mrf.mxu3  ;;  %v2357_v58 = vadd.f32 %v2356_v28, %v2299_v17  ;;  %v2300_v18 = vpop.f32.mrf.mxu1  ;;  %v2243_v42 = vadd.f32 %v2242_v33, %v4484_v5  ;;  %v633_v5 = vpack.c.bf16 %v409_v45, %v393_v48  ;;  %v647_v17 = vpack.c.bf16 %v439_v14, %v423_v10  ;;  %v454_v45 = vld [vmem:[%s4188_s29 + $0x660] sm:$0xff] }
 0x260   : > { %v648_v33 = vpack.c.bf16 %v440_v23, %v424_v1 }
 0x261   : > { %v4606_v36 = vadd.f32 %v2414_v29, %v2357_v58  ;;  %v2301_v31 = vadd.f32 %v2300_v18, %v2243_v42 }
 0x266   : > { %v2358_v32 = vpop.f32.mrf.mxu2  ;;  %v2245_v59 = vpop.f32.mrf.mxu0 }
 0x267   : > { %v2416_v50 = vpop.f32.mrf.mxu3  ;;  %v2359_v56 = vadd.f32 %v2358_v32, %v2301_v31  ;;  %v2303_v40 = vpop.f32.mrf.mxu1  ;;  %v2246_v62 = vadd.f32 %v2245_v59, %v4487_v16  ;;  %v470_v32 = vld [vmem:[%s4188_s29 + $0x6e0] sm:$0xff]  ;;  %v457_v59 = vld [vmem:[%s4188_s29 + $0x678] sm:$0xff] }
 0x269   : > { %v4617_v13 = vadd.f32 %v2416_v50, %v2359_v56  ;;  %v2304_v63 = vadd.f32 %v2303_v40, %v2246_v62  ;;  %2466 = vmatmul.bf16.gmra.mxu0 %v630_v53  ;;  %v455_v50 = vld [vmem:[%s4188_s29 + $0x668] sm:$0xff]  ;;  %v472_v56 = vld [vmem:[%s4188_s29 + $0x6f0] sm:$0xff]  ;;  %v473_v40 = vld [vmem:[%s4188_s29 + $0x6f8] sm:$0xff]  ;;  %v662_v62 = vpack.c.bf16 %v470_v32, %v454_v45 }
 0x26a   : > { %2524 = vmatmul.bf16.gmra.mxu1 %v631_v34  ;;  %v471_v53 = vld [vmem:[%s4188_s29 + $0x6e8] sm:$0xff]  ;;  %v456_v34 = vld [vmem:[%s4188_s29 + $0x670] sm:$0xff] }
 0x26b   : > { %2582 = vmatmul.bf16.gmra.mxu2 %v632_v61 }
 0x26c   : > { %2640 = vmatmul.bf16.gmra.mxu3 %v633_v5 }
 0x26e   : > { %v2361_v55 = vpop.f32.mrf.mxu2  ;;  %v2247_v4 = vpop.f32.mrf.mxu0 }
 0x26f   : > { %v2419_v19 = vpop.f32.mrf.mxu3  ;;  %v2362_v3 = vadd.f32 %v2361_v55, %v2304_v63  ;;  %v2305_v6 = vpop.f32.mrf.mxu1  ;;  %v2248_v16 = vadd.f32 %v2247_v4, %v4498_v49  ;;  %v649_v49 = vpack.c.bf16 %v441_v21, %v425_v20  ;;  %v663_v63 = vpack.c.bf16 %v471_v53, %v455_v50  ;;  %v486_v21 = vld [vmem:[%s4188_s29 + $0x760] sm:$0xff] }
 0x270   : > { %v664_v4 = vpack.c.bf16 %v472_v56, %v456_v34 }
 0x271   : > { %v4620_v60 = vadd.f32 %v2419_v19, %v2362_v3  ;;  %v2306_v8 = vadd.f32 %v2305_v6, %v2248_v16 }
 0x276   : > { %v2363_v44 = vpop.f32.mrf.mxu2  ;;  %v2250_v29 = vpop.f32.mrf.mxu0 }
 0x277   : > { %v2421_v27 = vpop.f32.mrf.mxu3  ;;  %v2364_v28 = vadd.f32 %v2363_v44, %v2306_v8  ;;  %v2308_v58 = vpop.f32.mrf.mxu1  ;;  %v2251_v18 = vadd.f32 %v2250_v29, %v4501_v57  ;;  %v502_v44 = vld [vmem:[%s4188_s29 + $0x7e0] sm:$0xff]  ;;  %v489_v29 = vld [vmem:[%s4188_s29 + $0x778] sm:$0xff] }
 0x279   : > { %v4631_v42 = vadd.f32 %v2421_v27, %v2364_v28  ;;  %v2309_v31 = vadd.f32 %v2308_v58, %v2251_v18  ;;  %2471 = vmatmul.bf16.gmra.mxu0 %v646_v24  ;;  %v487_v27 = vld [vmem:[%s4188_s29 + $0x768] sm:$0xff]  ;;  %v504_v28 = vld [vmem:[%s4188_s29 + $0x7f0] sm:$0xff]  ;;  %v505_v58 = vld [vmem:[%s4188_s29 + $0x7f8] sm:$0xff]  ;;  %v678_v18 = vpack.c.bf16 %v502_v44, %v486_v21 }
 0x27a   : > { %2529 = vmatmul.bf16.gmra.mxu1 %v647_v17  ;;  %v503_v24 = vld [vmem:[%s4188_s29 + $0x7e8] sm:$0xff]  ;;  %v488_v17 = vld [vmem:[%s4188_s29 + $0x770] sm:$0xff] }
 0x27b   : > { %2587 = vmatmul.bf16.gmra.mxu2 %v648_v33 }
 0x27c   : > { %2645 = vmatmul.bf16.gmra.mxu3 %v649_v49 }
 0x27e   : > { %v2366_v37 = vpop.f32.mrf.mxu2  ;;  %v2252_v39 = vpop.f32.mrf.mxu0 }
 0x27f   : > { %v2424_v38 = vpop.f32.mrf.mxu3  ;;  %v2367_v35 = vadd.f32 %v2366_v37, %v2309_v31  ;;  %v2310_v52 = vpop.f32.mrf.mxu1  ;;  %v2253_v57 = vadd.f32 %v2252_v39, %v4512_v26  ;;  %v665_v26 = vpack.c.bf16 %v473_v40, %v457_v59  ;;  %v679_v31 = vpack.c.bf16 %v503_v24, %v487_v27  ;;  %v534_v59 = vld [vmem:[%s4188_s29 + $0x8e0] sm:$0xff]  ;;  %v519_v40 = vld [vmem:[%s4188_s29 + $0x868] sm:$0xff] }
 0x280   : > { %v681_v39 = vpack.c.bf16 %v505_v58, %v489_v29  ;;  %v552_v29 = vld [vmem:[%s4188_s29 + $0x970] sm:$0xff]  ;;  %v553_v58 = vld [vmem:[%s4188_s29 + $0x978] sm:$0xff] }
 0x281   : > { %v4634_v47 = vadd.f32 %v2424_v38, %v2367_v35  ;;  %v2311_v48 = vadd.f32 %v2310_v52, %v2253_v57 }
 0x286   : > { %v2368_v61 = vpop.f32.mrf.mxu2  ;;  %v2255_v19 = vpop.f32.mrf.mxu0 }
 0x287   : > { %v2426_v5 = vpop.f32.mrf.mxu3  ;;  %v2369_v55 = vadd.f32 %v2368_v61, %v2311_v48  ;;  %v2313_v3 = vpop.f32.mrf.mxu1  ;;  %v2256_v6 = vadd.f32 %v2255_v19, %v4515_v30  ;;  %v535_v61 = vld [vmem:[%s4188_s29 + $0x8e8] sm:$0xff] }
 0x289   : > { %v4645_v16 = vadd.f32 %v2426_v5, %v2369_v55  ;;  %v2314_v8 = vadd.f32 %v2313_v3, %v2256_v6  ;;  %2476 = vmatmul.bf16.gmra.mxu0 %v662_v62  ;;  %v520_v5 = vld [vmem:[%s4188_s29 + $0x870] sm:$0xff]  ;;  %v537_v55 = vld [vmem:[%s4188_s29 + $0x8f8] sm:$0xff] }
 0x28a   : > { %2534 = vmatmul.bf16.gmra.mxu1 %v663_v63  ;;  %v536_v62 = vld [vmem:[%s4188_s29 + $0x8f0] sm:$0xff]  ;;  %v521_v63 = vld [vmem:[%s4188_s29 + $0x878] sm:$0xff] }
 0x28b   : > { %2592 = vmatmul.bf16.gmra.mxu2 %v664_v4 }
 0x28c   : > { %2650 = vmatmul.bf16.gmra.mxu3 %v665_v26  ;;  %v695_v26 = vpack.c.bf16 %v535_v61, %v519_v40 }
 0x28e   : > { %v2371_v9 = vpop.f32.mrf.mxu2  ;;  %v2257_v14 = vpop.f32.mrf.mxu0 }
 0x28f   : > { %v2429_v12 = vpop.f32.mrf.mxu3  ;;  %v2372_v10 = vadd.f32 %v2371_v9, %v2314_v8  ;;  %v2315_v1 = vpop.f32.mrf.mxu1  ;;  %v2258_v30 = vadd.f32 %v2257_v14, %v4526_v0  ;;  %v680_v0 = vpack.c.bf16 %v504_v28, %v488_v17  ;;  %v696_v9 = vpack.c.bf16 %v536_v62, %v520_v5  ;;  %v551_v28 = vld [vmem:[%s4188_s29 + $0x968] sm:$0xff] }
 0x291   : > { %v4648_v23 = vadd.f32 %v2429_v12, %v2372_v10  ;;  %v2316_v20 = vadd.f32 %v2315_v1, %v2258_v30  ;;  %v697_v12 = vpack.c.bf16 %v537_v55, %v521_v63 }
 0x296   : > { %v2373_v33 = vpop.f32.mrf.mxu2  ;;  %v2260_v38 = vpop.f32.mrf.mxu0 }
 0x297   : > { %v2431_v49 = vpop.f32.mrf.mxu3  ;;  %v2374_v37 = vadd.f32 %v2373_v33, %v2316_v20  ;;  %v2318_v35 = vpop.f32.mrf.mxu1  ;;  %v2261_v52 = vadd.f32 %v2260_v38, %v4528_v15  ;;  %v518_v15 = vld [vmem:[%s4188_s29 + $0x860] sm:$0xff] }
 0x298   : > { %v694_v4 = vpack.c.bf16 %v534_v59, %v518_v15 }
 0x299   : > { %v4659_v57 = vadd.f32 %v2431_v49, %v2374_v37  ;;  %v2319_v48 = vadd.f32 %v2318_v35, %v2261_v52  ;;  %2481 = vmatmul.bf16.gmra.mxu0 %v678_v18  ;;  %v711_v37 = vpack.c.bf16 %v551_v28, %v551_v28  ;;  %v713_v52 = vpack.c.bf16 %v553_v58, %v553_v58 }
 0x29a   : > { %2539 = vmatmul.bf16.gmra.mxu1 %v679_v31 }
 0x29b   : > { %2597 = vmatmul.bf16.gmra.mxu2 %v680_v0 }
 0x29c   : > { %2655 = vmatmul.bf16.gmra.mxu3 %v681_v39  ;;  %v712_v39 = vpack.c.bf16 %v552_v29, %v552_v29 }
 0x29e   : > { %v2376_v45 = vpop.f32.mrf.mxu2  ;;  %v2262_v53 = vpop.f32.mrf.mxu0 }
 0x29f   : > { %v2434_v32 = vpop.f32.mrf.mxu3  ;;  %v2377_v50 = vadd.f32 %v2376_v45, %v2319_v48  ;;  %v2320_v34 = vpop.f32.mrf.mxu1 }
 0x2a1   : > { %v4661_v56 = vadd.f32 %v2434_v32, %v2377_v50 }
 0x2a6   : > { %v2378_v19 = vpop.f32.mrf.mxu2  ;;  %v2447_v6 = vpop.f32.mrf.mxu0 }
 0x2a7   : > { %v2436_v3 = vpop.f32.mrf.mxu3  ;;  %v2505_v8 = vpop.f32.mrf.mxu1  ;;  %v2448_v10 = vadd.f32 %v2447_v6, %v4540_v51  ;;  %v550_v51 = vld [vmem:[%s4188_s29 + $0x960] sm:$0xff] }
 0x2a8   : > { %v710_v31 = vpack.c.bf16 %v550_v51, %v550_v51 }
 0x2a9   : > { %2486 = vmatmul.bf16.gmra.mxu0 %v694_v4  ;;  %v2506_v14 = vadd.f32 %v2505_v8, %v2448_v10 }
 0x2aa   : > { %2544 = vmatmul.bf16.gmra.mxu1 %v695_v26 }
 0x2ab   : > { %2602 = vmatmul.bf16.gmra.mxu2 %v696_v9 }
 0x2ac   : > { %2660 = vmatmul.bf16.gmra.mxu3 %v697_v12 }
 0x2ae   : > { %v2563_v1 = vpop.f32.mrf.mxu2  ;;  %v2449_v21 = vpop.f32.mrf.mxu0 }
 0x2af   : > { %v2621_v30 = vpop.f32.mrf.mxu3  ;;  %v2564_v20 = vadd.f32 %v2563_v1, %v2506_v14  ;;  %v2507_v44 = vpop.f32.mrf.mxu1  ;;  %v2450_v24 = vadd.f32 %v2449_v21, %v4547_v54 }
 0x2b1   : > { %v4672_v27 = vadd.f32 %v2621_v30, %v2564_v20  ;;  %v2508_v33 = vadd.f32 %v2507_v44, %v2450_v24 }
 0x2b3   : > { %v2670_v17 = vmul.f32 %v4672_v27, %v4672_v27 }
 0x2b5   : > { %2689 = vadd.xlane.f32.xlu0 %v2670_v17 }
 0x2b6   : > { %v2565_v49 = vpop.f32.mrf.mxu2  ;;  %v2452_v35 = vpop.f32.mrf.mxu0 }
 0x2b7   : > { %v2623_v18 = vpop.f32.mrf.mxu3  ;;  %v2566_v38 = vadd.f32 %v2565_v49, %v2508_v33  ;;  %v2510_v0 = vpop.f32.mrf.mxu1  ;;  %v2453_v54 = vadd.f32 %v2452_v35, %v4550_v7 }
 0x2b9   : > { %v4681_v48 = vadd.f32 %v2623_v18, %v2566_v38  ;;  %2491 = vmatmul.bf16.gmra.mxu0 %v710_v31  ;;  %v2511_v32 = vadd.f32 %v2510_v0, %v2453_v54 }
 0x2ba   : > { %2549 = vmatmul.bf16.gmra.mxu1 %v711_v37 }
 0x2bb   : > { %2607 = vmatmul.bf16.gmra.mxu2 %v712_v39  ;;  %v2671_v45 = vmul.f32 %v4681_v48, %v4681_v48 }
 0x2bc   : > { %2665 = vmatmul.bf16.gmra.mxu3 %v713_v52 }
 0x2bd   : > { %2691 = vadd.xlane.f32.xlu0 %v2671_v45 }
 0x2be   : > { %v2568_v50 = vpop.f32.mrf.mxu2  ;;  %v2454_v15 = vpop.f32.mrf.mxu0 }
 0x2bf   : > { %v2626_v53 = vpop.f32.mrf.mxu3  ;;  %v2569_v34 = vadd.f32 %v2568_v50, %v2511_v32  ;;  %v2512_v59 = vpop.f32.mrf.mxu1  ;;  %v2455_v61 = vadd.f32 %v2454_v15, %v4561_v41 }
 0x2c1   : > { %v4686_v40 = vadd.f32 %v2626_v53, %v2569_v34  ;;  %v2513_v5 = vadd.f32 %v2512_v59, %v2455_v61 }
 0x2c3   : > { %v2672_v7 = vmul.f32 %v4686_v40, %v4686_v40 }
 0x2c5   : > { %2693 = vadd.xlane.f32.xlu1 %v2672_v7 }
 0x2c6   : > { %v2570_v62 = vpop.f32.mrf.mxu2  ;;  %v2457_v19 = vpop.f32.mrf.mxu0 }
 0x2c7   : > { %v2628_v63 = vpop.f32.mrf.mxu3  ;;  %v2571_v55 = vadd.f32 %v2570_v62, %v2513_v5  ;;  %v2515_v3 = vpop.f32.mrf.mxu1  ;;  %v2458_v26 = vadd.f32 %v2457_v19, %v4564_v11 }
 0x2c9   : > { %v4691_v4 = vadd.f32 %v2628_v63, %v2571_v55  ;;  %v2516_v8 = vadd.f32 %v2515_v3, %v2458_v26 }
 0x2cb   : > { %v2673_v6 = vmul.f32 %v4691_v4, %v4691_v4 }
 0x2cd   : > { %2695 = vadd.xlane.f32.xlu1 %v2673_v6 }
 0x2ce   : > { %v2573_v41 = vpop.f32.mrf.mxu2  ;;  %v2459_v10 = vpop.f32.mrf.mxu0 }
 0x2cf   : > { %v2631_v9 = vpop.f32.mrf.mxu3  ;;  %v2574_v12 = vadd.f32 %v2573_v41, %v2516_v8  ;;  %v2517_v14 = vpop.f32.mrf.mxu1  ;;  %v2460_v30 = vadd.f32 %v2459_v10, %v4575_v2 }
 0x2d1   : > { %v4696_v1 = vadd.f32 %v2631_v9, %v2574_v12  ;;  %v2518_v21 = vadd.f32 %v2517_v14, %v2460_v30 }
 0x2d3   : > { %v2674_v20 = vmul.f32 %v4696_v1, %v4696_v1 }
 0x2d5   : > { %2697 = vadd.xlane.f32.xlu2 %v2674_v20 }
 0x2d6   : > { %v2575_v11 = vpop.f32.mrf.mxu2  ;;  %v2462_v17 = vpop.f32.mrf.mxu0 }
 0x2d7   : > { %v2633_v44 = vpop.f32.mrf.mxu3  ;;  %v2576_v24 = vadd.f32 %v2575_v11, %v2518_v21  ;;  %v2520_v51 = vpop.f32.mrf.mxu1  ;;  %v2463_v29 = vadd.f32 %v2462_v17, %v4578_v25 }
 0x2d9   : > { %v4701_v28 = vadd.f32 %v2633_v44, %v2576_v24  ;;  %v2521_v33 = vadd.f32 %v2520_v51, %v2463_v29 }
 0x2db   : > { %v2675_v58 = vmul.f32 %v4701_v28, %v4701_v28 }
 0x2dd   : > { %2699 = vadd.xlane.f32.xlu2 %v2675_v58 }
 0x2de   : > { %v2578_v2 = vpop.f32.mrf.mxu2  ;;  %v2464_v31 = vpop.f32.mrf.mxu0 }
 0x2df   : > { %v2636_v49 = vpop.f32.mrf.mxu3  ;;  %v2579_v18 = vadd.f32 %v2578_v2, %v2521_v33  ;;  %v2522_v37 = vpop.f32.mrf.mxu1  ;;  %v2465_v35 = vadd.f32 %v2464_v31, %v4589_v43 }
 0x2e1   : > { %v4706_v38 = vadd.f32 %v2636_v49, %v2579_v18  ;;  %v2523_v39 = vadd.f32 %v2522_v37, %v2465_v35 }
 0x2e3   : > { %v2676_v0 = vmul.f32 %v4706_v38, %v4706_v38 }
 0x2e5   : > { %2701 = vadd.xlane.f32.xlu0 %v2676_v0 }
 0x2e6   : > { %v2580_v25 = vpop.f32.mrf.mxu2  ;;  %v2467_v45 = vpop.f32.mrf.mxu0 }
 0x2e7   : > { %v2638_v52 = vpop.f32.mrf.mxu3  ;;  %v2581_v54 = vadd.f32 %v2580_v25, %v2523_v39  ;;  %v2525_v32 = vpop.f32.mrf.mxu1  ;;  %v2468_v53 = vadd.f32 %v2467_v45, %v4592_v46 }
 0x2e9   : > { %v4711_v50 = vadd.f32 %v2638_v52, %v2581_v54  ;;  %v2526_v15 = vadd.f32 %v2525_v32, %v2468_v53 }
 0x2eb   : > { %v2677_v34 = vmul.f32 %v4711_v50, %v4711_v50 }
 0x2ed   : > { %2703 = vadd.xlane.f32.xlu1 %v2677_v34 }
 0x2ee   : > { %v2583_v43 = vpop.f32.mrf.mxu2  ;;  %v2469_v7 = vpop.f32.mrf.mxu0 }
 0x2ef   : > { %v2641_v59 = vpop.f32.mrf.mxu3  ;;  %v2584_v61 = vadd.f32 %v2583_v43, %v2526_v15  ;;  %v2527_v5 = vpop.f32.mrf.mxu1  ;;  %v2470_v63 = vadd.f32 %v2469_v7, %v4603_v22 }
 0x2f1   : > { %v4716_v62 = vadd.f32 %v2641_v59, %v2584_v61  ;;  %v2528_v19 = vadd.f32 %v2527_v5, %v2470_v63 }
 0x2f3   : > { %v2678_v55 = vmul.f32 %v4716_v62, %v4716_v62 }
 0x2f5   : > { %2705 = vadd.xlane.f32.xlu2 %v2678_v55 }
 0x2f6   : > { %v2585_v46 = vpop.f32.mrf.mxu2  ;;  %v2472_v6 = vpop.f32.mrf.mxu0 }
 0x2f7   : > { %v2643_v3 = vpop.f32.mrf.mxu3  ;;  %v2586_v26 = vadd.f32 %v2585_v46, %v2528_v19  ;;  %v2530_v8 = vpop.f32.mrf.mxu1  ;;  %v2473_v9 = vadd.f32 %v2472_v6, %v4606_v36 }
 0x2f9   : > { %v4721_v41 = vadd.f32 %v2643_v3, %v2586_v26  ;;  %v2531_v10 = vadd.f32 %v2530_v8, %v2473_v9 }
 0x2fb   : > { %v2679_v12 = vmul.f32 %v4721_v41, %v4721_v41 }
 0x2fd   : > { %2707 = vadd.xlane.f32.xlu0 %v2679_v12 }
 0x2fe   : > { %v2588_v22 = vpop.f32.mrf.mxu2  ;;  %v2474_v20 = vpop.f32.mrf.mxu0 }
 0x2ff   : > { %v2646_v14 = vpop.f32.mrf.mxu3  ;;  %v2589_v30 = vadd.f32 %v2588_v22, %v2531_v10  ;;  %v2532_v21 = vpop.f32.mrf.mxu1  ;;  %v2475_v44 = vadd.f32 %v2474_v20, %v4617_v13 }
 0x301   : > { %v4726_v11 = vadd.f32 %v2646_v14, %v2589_v30  ;;  %v2533_v17 = vadd.f32 %v2532_v21, %v2475_v44 }
 0x303   : > { %v2680_v24 = vmul.f32 %v4726_v11, %v4726_v11 }
 0x305   : > { %2709 = vadd.xlane.f32.xlu1 %v2680_v24 }
 0x306   : > { %v2590_v36 = vpop.f32.mrf.mxu2  ;;  %v2477_v58 = vpop.f32.mrf.mxu0 }
 0x307   : > { %v2648_v51 = vpop.f32.mrf.mxu3  ;;  %v2591_v29 = vadd.f32 %v2590_v36, %v2533_v17  ;;  %v2535_v33 = vpop.f32.mrf.mxu1  ;;  %v2478_v49 = vadd.f32 %v2477_v58, %v4620_v60 }
 0x309   : > { %v4731_v2 = vadd.f32 %v2648_v51, %v2591_v29  ;;  %v2536_v31 = vadd.f32 %v2535_v33, %v2478_v49 }
 0x30b   : > { %v2681_v18 = vmul.f32 %v4731_v2, %v4731_v2 }
 0x30d   : > { %2711 = vadd.xlane.f32.xlu2 %v2681_v18 }
 0x30e   : > { %v2593_v13 = vpop.f32.mrf.mxu2  ;;  %v2479_v0 = vpop.f32.mrf.mxu0 }
 0x30f   : > { %v2651_v37 = vpop.f32.mrf.mxu3  ;;  %v2594_v35 = vadd.f32 %v2593_v13, %v2536_v31  ;;  %v2537_v39 = vpop.f32.mrf.mxu1  ;;  %v2480_v52 = vadd.f32 %v2479_v0, %v4631_v42 }
 0x311   : > { %v4736_v25 = vadd.f32 %v2651_v37, %v2594_v35  ;;  %v2538_v45 = vadd.f32 %v2537_v39, %v2480_v52 }
 0x313   : > { %v2682_v54 = vmul.f32 %v4736_v25, %v4736_v25 }
 0x315   : > { %2713 = vadd.xlane.f32.xlu0 %v2682_v54 }
 0x316   : > { %v2595_v60 = vpop.f32.mrf.mxu2  ;;  %v2482_v34 = vpop.f32.mrf.mxu0 }
 0x317   : > { %v2653_v32 = vpop.f32.mrf.mxu3  ;;  %v2596_v53 = vadd.f32 %v2595_v60, %v2538_v45  ;;  %v2540_v15 = vpop.f32.mrf.mxu1  ;;  %v2483_v59 = vadd.f32 %v2482_v34, %v4634_v47 }
 0x319   : > { %v4741_v43 = vadd.f32 %v2653_v32, %v2596_v53  ;;  %v2541_v7 = vadd.f32 %v2540_v15, %v2483_v59 }
 0x31b   : > { %v2683_v61 = vmul.f32 %v4741_v43, %v4741_v43 }
 0x31d   : > { %2715 = vadd.xlane.f32.xlu1 %v2683_v61 }
 0x31e   : > { %v2598_v42 = vpop.f32.mrf.mxu2  ;;  %v2484_v55 = vpop.f32.mrf.mxu0 }
 0x31f   : > { %v2656_v5 = vpop.f32.mrf.mxu3  ;;  %v2599_v63 = vadd.f32 %v2598_v42, %v2541_v7  ;;  %v2542_v19 = vpop.f32.mrf.mxu1  ;;  %v2485_v3 = vadd.f32 %v2484_v55, %v4645_v16 }
 0x321   : > { %v4746_v46 = vadd.f32 %v2656_v5, %v2599_v63  ;;  %v2543_v6 = vadd.f32 %v2542_v19, %v2485_v3 }
 0x323   : > { %v2684_v26 = vmul.f32 %v4746_v46, %v4746_v46 }
 0x325   : > { %2717 = vadd.xlane.f32.xlu2 %v2684_v26 }
 0x326   : > { %v2600_v47 = vpop.f32.mrf.mxu2  ;;  %v2487_v12 = vpop.f32.mrf.mxu0 }
 0x327   : > { %v2658_v8 = vpop.f32.mrf.mxu3  ;;  %v2601_v9 = vadd.f32 %v2600_v47, %v2543_v6  ;;  %v2545_v10 = vpop.f32.mrf.mxu1  ;;  %v2488_v30 = vadd.f32 %v2487_v12, %v4648_v23 }
 0x328   : > { %v2690_v22 = vpop.xlane.xlu0 %2689 }
 0x329   : > { %v4751_v14 = vadd.f32 %v2658_v8, %v2601_v9  ;;  %v2727_v20 = vmax.f32 %v2690_v22, 1e-24  ;;  %v2546_v21 = vadd.f32 %v2545_v10, %v2488_v30 }
 0x32b   : > { %3844 = vrsqrt.f32 %v2727_v20  ;;  %v2685_v16 = vmul.f32 %v4751_v14, %v4751_v14  ;;  %vm2752_vm1 = vweird.f32 %v2727_v20 }
 0x32d   : > { %2719 = vadd.xlane.f32.xlu0 %v2685_v16 }
 0x32e   : > { %v2603_v44 = vpop.f32.mrf.mxu2  ;;  %v2489_v36 = vpop.f32.mrf.mxu0 }
 0x32f   : > { %v2661_v24 = vpop.f32.mrf.mxu3  ;;  %v2604_v17 = vadd.f32 %v2603_v44, %v2546_v21  ;;  %v2547_v51 = vpop.f32.mrf.mxu1  ;;  %v2490_v49 = vadd.f32 %v2489_v36, %v4659_v57 }
 0x330   : > { %v2692_v29 = vpop.xlane.xlu0 %2691 }
 0x331   : > { %v3845_v58 = vpop.eup %3844  ;;  %v4756_v33 = vadd.f32 %v2661_v24, %v2604_v17  ;;  %v2728_v23 = vmax.f32 %v2692_v29, 1e-24  ;;  %v2548_v37 = vadd.f32 %v2547_v51, %v2490_v49 }
 0x332   : > { %v2747_v18 = vmul.f32 %v3845_v58, %v2727_v20  ;;  %vm2753_vm0 = vweird.f32 %v3845_v58 }
 0x333   : > { %3846 = vrsqrt.f32 %v2728_v23  ;;  %v2686_v31 = vmul.f32 %v4756_v33, %v4756_v33  ;;  %vm2754_vm2 = vmor %vm2752_vm1, %vm2753_vm0  ;;  %vm2762_vm4 = vweird.f32 %v2728_v23 }
 0x334   : > { %v2748_v13 = vmul.f32 %v3845_v58, %v2747_v18 }
 0x335   : > { %2721 = vadd.xlane.f32.xlu1 %v2686_v31 }
 0x336   : > { %v2749_v35 = vmul.f32 0.5, %v2748_v13  ;;  %v2605_v0 = vpop.f32.mrf.mxu2  ;;  %v2492_v54 = vpop.f32.mrf.mxu0 }
 0x337   : > { %v2663_v39 = vpop.f32.mrf.mxu3  ;;  %v2606_v52 = vadd.f32 %v2605_v0, %v2548_v37  ;;  %v2550_v45 = vpop.f32.mrf.mxu1  ;;  %v2493_v34 = vadd.f32 %v2492_v54, %v4661_v56 }
 0x338   : > { %v2750_v60 = vsub.f32 1.5, %v2749_v35  ;;  %v2694_v32 = vpop.xlane.xlu1 %2693 }
 0x339   : > { %v3847_v57 = vpop.eup %3846  ;;  %v4762_v53 = vadd.f32 %v2663_v39, %v2606_v52  ;;  %v2729_v15 = vmax.f32 %v2694_v32, 1e-24  ;;  %v2551_v55 = vadd.f32 %v2550_v45, %v2493_v34 }
 0x33a   : > { %v2751_v59 = vmul.f32 %v3845_v58, %v2750_v60  ;;  %v2757_v61 = vmul.f32 %v3847_v57, %v2728_v23  ;;  %vm2763_vm3 = vweird.f32 %v3847_v57 }
 0x33b   : > { %3848 = vrsqrt.f32 %v2729_v15  ;;  %v2687_v7 = vmul.f32 %v4762_v53, %v4762_v53  ;;  %vm2764_vm5 = vmor %vm2762_vm4, %vm2763_vm3  ;;  %vm2772_vm7 = vweird.f32 %v2729_v15 }
 0x33c   : > { %v2755_v42 = vsel %vm2754_vm2, %v3845_v58, %v2751_v59  ;;  %v2758_v5 = vmul.f32 %v3847_v57, %v2757_v61 }
 0x33d   : > { %v2936_v63 = vmul.f32 %v2755_v42, %v4672_v27  ;;  %2723 = vadd.xlane.f32.xlu2 %v2687_v7 }
 0x33e   : > { %v2759_v19 = vmul.f32 0.5, %v2758_v5  ;;  %v2608_v3 = vpop.f32.mrf.mxu2  ;;  %v2494_v6 = vpop.f32.mrf.mxu0 }
 0x33f   : > { %v2666_v26 = vpop.f32.mrf.mxu3  ;;  %2955 = vst [vmem:[%s4768_s22] sm:$0xff] %v2936_v63  ;;  %v2609_v56 = vadd.f32 %v2608_v3, %v2551_v55  ;;  %v2552_v47 = vpop.f32.mrf.mxu1 }
 0x340   : > { %v2760_v8 = vsub.f32 1.5, %v2759_v19  ;;  %v2696_v9 = vpop.xlane.xlu1 %2695 }
 0x341   : > { %v3849_v12 = vpop.eup %3848  ;;  %v4771_v10 = vadd.f32 %v2666_v26, %v2609_v56  ;;  %v2730_v27 = vmax.f32 %v2696_v9, 1e-24 }
 0x342   : > { %v2761_v22 = vmul.f32 %v3847_v57, %v2760_v8  ;;  %v2767_v30 = vmul.f32 %v3849_v12, %v2729_v15  ;;  %vm2773_vm6 = vweird.f32 %v3849_v12 }
 0x343   : > { %3850 = vrsqrt.f32 %v2730_v27  ;;  %v2688_v20 = vmul.f32 %v4771_v10, %v4771_v10  ;;  %vm2774_vm8 = vmor %vm2772_vm7, %vm2773_vm6  ;;  %vm2782_vm10 = vweird.f32 %v2730_v27 }
 0x344   : > { %v2765_v16 = vsel %vm2764_vm5, %v3847_v57, %v2761_v22  ;;  %v2768_v21 = vmul.f32 %v3849_v12, %v2767_v30 }
 0x345   : > { %v2937_v44 = vmul.f32 %v2765_v16, %v4681_v48  ;;  %2725 = vadd.xlane.f32.xlu0 %v2688_v20 }
 0x346   : > { %v2769_v24 = vmul.f32 0.5, %v2768_v21  ;;  %v2610_v17 = vpop.f32.mrf.mxu2 }
 0x347   : > { %v2668_v36 = vpop.f32.mrf.mxu3  ;;  %2956 = vst [vmem:[%s4768_s22 + $0x8] sm:$0xff] %v2937_v44 }
 0x348   : > { %v2770_v51 = vsub.f32 1.5, %v2769_v24  ;;  %v2698_v29 = vpop.xlane.xlu2 %2697 }
 0x349   : > { %v3851_v58 = vpop.eup %3850  ;;  %v2731_v49 = vmax.f32 %v2698_v29, 1e-24 }
 0x34a   : > { %v2771_v23 = vmul.f32 %v3849_v12, %v2770_v51  ;;  %v2777_v18 = vmul.f32 %v3851_v58, %v2730_v27  ;;  %vm2783_vm9 = vweird.f32 %v3851_v58 }
 0x34b   : > { %3852 = vrsqrt.f32 %v2731_v49  ;;  %vm2784_vm11 = vmor %vm2782_vm10, %vm2783_vm9  ;;  %vm2792_vm13 = vweird.f32 %v2731_v49 }
 0x34c   : > { %v2775_v31 = vsel %vm2774_vm8, %v3849_v12, %v2771_v23  ;;  %v2778_v13 = vmul.f32 %v3851_v58, %v2777_v18 }
 0x34d   : > { %v2938_v48 = vmul.f32 %v2775_v31, %v4686_v40 }
 0x34e   : > { %v2779_v37 = vmul.f32 0.5, %v2778_v13 }
 0x34f   : > { %2957 = vst [vmem:[%s4768_s22 + $0x10] sm:$0xff] %v2938_v48 }
 0x350   : > { %v2780_v35 = vsub.f32 1.5, %v2779_v37  ;;  %v2700_v0 = vpop.xlane.xlu2 %2699 }
 0x351   : > { %v3853_v39 = vpop.eup %3852  ;;  %v2732_v52 = vmax.f32 %v2700_v0, 1e-24 }
 0x352   : > { %v2781_v54 = vmul.f32 %v3851_v58, %v2780_v35  ;;  %v2787_v45 = vmul.f32 %v3853_v39, %v2731_v49  ;;  %vm2793_vm12 = vweird.f32 %v3853_v39 }
 0x353   : > { %3854 = vrsqrt.f32 %v2732_v52  ;;  %vm2794_vm14 = vmor %vm2792_vm13, %vm2793_vm12  ;;  %vm2802_vm0 = vweird.f32 %v2732_v52 }
 0x354   : > { %v2785_v60 = vsel %vm2784_vm11, %v3851_v58, %v2781_v54  ;;  %v2788_v32 = vmul.f32 %v3853_v39, %v2787_v45 }
 0x355   : > { %v2939_v57 = vmul.f32 %v2785_v60, %v4691_v4 }
 0x356   : > { %v2789_v34 = vmul.f32 0.5, %v2788_v32 }
 0x357   : > { %2958 = vst [vmem:[%s4768_s22 + $0x18] sm:$0xff] %v2939_v57 }
 0x358   : > { %v2790_v40 = vsub.f32 1.5, %v2789_v34  ;;  %v2702_v15 = vpop.xlane.xlu0 %2701 }
 0x359   : > { %v3855_v59 = vpop.eup %3854  ;;  %v2733_v61 = vmax.f32 %v2702_v15, 1e-24 }
 0x35a   : > { %v2791_v7 = vmul.f32 %v3853_v39, %v2790_v40  ;;  %v2797_v42 = vmul.f32 %v3855_v59, %v2732_v52  ;;  %vm2803_vm15 = vweird.f32 %v3855_v59 }
 0x35b   : > { %3856 = vrsqrt.f32 %v2733_v61  ;;  %vm2804_vm1 = vmor %vm2802_vm0, %vm2803_vm15  ;;  %vm2812_vm3 = vweird.f32 %v2733_v61 }
 0x35c   : > { %v2795_v5 = vsel %vm2794_vm14, %v3853_v39, %v2791_v7  ;;  %v2798_v63 = vmul.f32 %v3855_v59, %v2797_v42 }
 0x35d   : > { %v2940_v55 = vmul.f32 %v2795_v5, %v4696_v1 }
 0x35e   : > { %v2799_v19 = vmul.f32 0.5, %v2798_v63 }
 0x35f   : > { %2959 = vst [vmem:[%s4768_s22 + $0x20] sm:$0xff] %v2940_v55 }
 0x360   : > { %v2800_v4 = vsub.f32 1.5, %v2799_v19  ;;  %v2704_v3 = vpop.xlane.xlu1 %2703 }
 0x361   : > { %v3857_v26 = vpop.eup %3856  ;;  %v2734_v56 = vmax.f32 %v2704_v3, 1e-24 }
 0x362   : > { %v2801_v6 = vmul.f32 %v3855_v59, %v2800_v4  ;;  %v2807_v47 = vmul.f32 %v3857_v26, %v2733_v61  ;;  %vm2813_vm2 = vweird.f32 %v3857_v26 }
 0x363   : > { %3858 = vrsqrt.f32 %v2734_v56  ;;  %vm2814_vm4 = vmor %vm2812_vm3, %vm2813_vm2  ;;  %vm2822_vm6 = vweird.f32 %v2734_v56 }
 0x364   : > { %v2805_v8 = vsel %vm2804_vm1, %v3855_v59, %v2801_v6  ;;  %v2808_v9 = vmul.f32 %v3857_v26, %v2807_v47 }
 0x365   : > { %v2941_v12 = vmul.f32 %v2805_v8, %v4701_v28 }
 0x366   : > { %v2809_v27 = vmul.f32 0.5, %v2808_v9 }
 0x367   : > { %2960 = vst [vmem:[%s4768_s22 + $0x28] sm:$0xff] %v2941_v12 }
 0x368   : > { %v2810_v1 = vsub.f32 1.5, %v2809_v27  ;;  %v2706_v22 = vpop.xlane.xlu2 %2705 }
 0x369   : > { %v3859_v30 = vpop.eup %3858  ;;  %v2735_v20 = vmax.f32 %v2706_v22, 1e-24 }
 0x36a   : > { %v2811_v16 = vmul.f32 %v3857_v26, %v2810_v1  ;;  %v2817_v21 = vmul.f32 %v3859_v30, %v2734_v56  ;;  %vm2823_vm5 = vweird.f32 %v3859_v30 }
 0x36b   : > { %3860 = vrsqrt.f32 %v2735_v20  ;;  %vm2824_vm7 = vmor %vm2822_vm6, %vm2823_vm5  ;;  %vm2832_vm9 = vweird.f32 %v2735_v20 }
 0x36c   : > { %v2815_v44 = vsel %vm2814_vm4, %v3857_v26, %v2811_v16  ;;  %v2818_v24 = vmul.f32 %v3859_v30, %v2817_v21 }
 0x36d   : > { %v2942_v17 = vmul.f32 %v2815_v44, %v4706_v38 }
 0x36e   : > { %v2819_v36 = vmul.f32 0.5, %v2818_v24 }
 0x36f   : > { %2961 = vst [vmem:[%s4768_s22 + $0x30] sm:$0xff] %v2942_v17 }
 0x370   : > { %v2820_v28 = vsub.f32 1.5, %v2819_v36  ;;  %v2708_v51 = vpop.xlane.xlu0 %2707 }
 0x371   : > { %v3861_v29 = vpop.eup %3860  ;;  %v2736_v58 = vmax.f32 %v2708_v51, 1e-24 }
 0x372   : > { %v2821_v49 = vmul.f32 %v3859_v30, %v2820_v28  ;;  %v2827_v23 = vmul.f32 %v3861_v29, %v2735_v20  ;;  %vm2833_vm8 = vweird.f32 %v3861_v29 }
 0x373   : > { %3862 = vrsqrt.f32 %v2736_v58  ;;  %vm2834_vm10 = vmor %vm2832_vm9, %vm2833_vm8  ;;  %vm2842_vm12 = vweird.f32 %v2736_v58 }
 0x374   : > { %v2825_v18 = vsel %vm2824_vm7, %v3859_v30, %v2821_v49  ;;  %v2828_v31 = vmul.f32 %v3861_v29, %v2827_v23 }
 0x375   : > { %v2943_v13 = vmul.f32 %v2825_v18, %v4711_v50 }
 0x376   : > { %v2829_v48 = vmul.f32 0.5, %v2828_v31 }
 0x377   : > { %2962 = vst [vmem:[%s4768_s22 + $0x38] sm:$0xff] %v2943_v13 }
 0x378   : > { %v2830_v38 = vsub.f32 1.5, %v2829_v48  ;;  %v2710_v37 = vpop.xlane.xlu1 %2709 }
 0x379   : > { %v3863_v35 = vpop.eup %3862  ;;  %v2737_v0 = vmax.f32 %v2710_v37, 1e-24 }
 0x37a   : > { %v2831_v39 = vmul.f32 %v3861_v29, %v2830_v38  ;;  %v2837_v52 = vmul.f32 %v3863_v35, %v2736_v58  ;;  %vm2843_vm11 = vweird.f32 %v3863_v35 }
 0x37b   : > { %3864 = vrsqrt.f32 %v2737_v0  ;;  %vm2844_vm13 = vmor %vm2842_vm12, %vm2843_vm11  ;;  %vm2852_vm15 = vweird.f32 %v2737_v0 }
 0x37c   : > { %v2835_v54 = vsel %vm2834_vm10, %v3861_v29, %v2831_v39  ;;  %v2838_v45 = vmul.f32 %v3863_v35, %v2837_v52 }
 0x37d   : > { %v2944_v60 = vmul.f32 %v2835_v54, %v4716_v62 }
 0x37e   : > { %v2839_v32 = vmul.f32 0.5, %v2838_v45 }
 0x37f   : > { %2963 = vst [vmem:[%s4768_s22 + $0x40] sm:$0xff] %v2944_v60 }
 0x380   : > { %v2840_v50 = vsub.f32 1.5, %v2839_v32  ;;  %v2712_v57 = vpop.xlane.xlu2 %2711 }
 0x381   : > { %v3865_v34 = vpop.eup %3864  ;;  %v2738_v40 = vmax.f32 %v2712_v57, 1e-24 }
 0x382   : > { %v2841_v15 = vmul.f32 %v3863_v35, %v2840_v50  ;;  %v2847_v59 = vmul.f32 %v3865_v34, %v2737_v0  ;;  %vm2853_vm14 = vweird.f32 %v3865_v34 }
 0x383   : > { %3866 = vrsqrt.f32 %v2738_v40  ;;  %vm2854_vm0 = vmor %vm2852_vm15, %vm2853_vm14  ;;  %vm2862_vm2 = vweird.f32 %v2738_v40 }
 0x384   : > { %v2845_v61 = vsel %vm2844_vm13, %v3863_v35, %v2841_v15  ;;  %v2848_v7 = vmul.f32 %v3865_v34, %v2847_v59 }
 0x385   : > { %v2945_v42 = vmul.f32 %v2845_v61, %v4721_v41 }
 0x386   : > { %v2849_v5 = vmul.f32 0.5, %v2848_v7 }
 0x387   : > { %2964 = vst [vmem:[%s4768_s22 + $0x48] sm:$0xff] %v2945_v42 }
 0x388   : > { %v2850_v62 = vsub.f32 1.5, %v2849_v5  ;;  %v2714_v63 = vpop.xlane.xlu0 %2713 }
 0x389   : > { %v3867_v55 = vpop.eup %3866  ;;  %v2739_v19 = vmax.f32 %v2714_v63, 1e-24 }
 0x38a   : > { %v2851_v4 = vmul.f32 %v3865_v34, %v2850_v62  ;;  %v2857_v3 = vmul.f32 %v3867_v55, %v2738_v40  ;;  %vm2863_vm1 = vweird.f32 %v3867_v55 }
 0x38b   : > { %3868 = vrsqrt.f32 %v2739_v19  ;;  %vm2864_vm3 = vmor %vm2862_vm2, %vm2863_vm1  ;;  %vm2872_vm5 = vweird.f32 %v2739_v19 }
 0x38c   : > { %v2855_v26 = vsel %vm2854_vm0, %v3865_v34, %v2851_v4  ;;  %v2858_v56 = vmul.f32 %v3867_v55, %v2857_v3 }
 0x38d   : > { %v2946_v6 = vmul.f32 %v2855_v26, %v4726_v11 }
 0x38e   : > { %v2859_v47 = vmul.f32 0.5, %v2858_v56 }
 0x38f   : > { %2965 = vst [vmem:[%s4768_s22 + $0x50] sm:$0xff] %v2946_v6 }
 0x390   : > { %v2860_v41 = vsub.f32 1.5, %v2859_v47  ;;  %v2716_v8 = vpop.xlane.xlu1 %2715 }
 0x391   : > { %v3869_v9 = vpop.eup %3868  ;;  %v2740_v12 = vmax.f32 %v2716_v8, 1e-24 }
 0x392   : > { %v2861_v27 = vmul.f32 %v3867_v55, %v2860_v41  ;;  %v2867_v1 = vmul.f32 %v3869_v9, %v2739_v19  ;;  %vm2873_vm4 = vweird.f32 %v3869_v9 }
 0x393   : > { %3870 = vrsqrt.f32 %v2740_v12  ;;  %vm2874_vm6 = vmor %vm2872_vm5, %vm2873_vm4  ;;  %vm2882_vm8 = vweird.f32 %v2740_v12 }
 0x394   : > { %v2865_v22 = vsel %vm2864_vm3, %v3867_v55, %v2861_v27  ;;  %v2868_v30 = vmul.f32 %v3869_v9, %v2867_v1 }
 0x395   : > { %v2947_v20 = vmul.f32 %v2865_v22, %v4731_v2 }
 0x396   : > { %v2869_v16 = vmul.f32 0.5, %v2868_v30 }
 0x397   : > { %2966 = vst [vmem:[%s4768_s22 + $0x58] sm:$0xff] %v2947_v20 }
 0x398   : > { %v2870_v11 = vsub.f32 1.5, %v2869_v16  ;;  %v2718_v21 = vpop.xlane.xlu2 %2717 }
 0x399   : > { %v3871_v44 = vpop.eup %3870  ;;  %v2741_v24 = vmax.f32 %v2718_v21, 1e-24 }
 0x39a   : > { %v2871_v17 = vmul.f32 %v3869_v9, %v2870_v11  ;;  %v2877_v36 = vmul.f32 %v3871_v44, %v2740_v12  ;;  %vm2883_vm7 = vweird.f32 %v3871_v44 }
 0x39b   : > { %3872 = vrsqrt.f32 %v2741_v24  ;;  %vm2884_vm9 = vmor %vm2882_vm8, %vm2883_vm7  ;;  %vm2892_vm11 = vweird.f32 %v2741_v24 }
 0x39c   : > { %v2875_v28 = vsel %vm2874_vm6, %v3869_v9, %v2871_v17  ;;  %v2878_v51 = vmul.f32 %v3871_v44, %v2877_v36 }
 0x39d   : > { %v2948_v29 = vmul.f32 %v2875_v28, %v4736_v25 }
 0x39e   : > { %v2879_v58 = vmul.f32 0.5, %v2878_v51 }
 0x39f   : > { %2967 = vst [vmem:[%s4768_s22 + $0x60] sm:$0xff] %v2948_v29 }
 0x3a0   : > { %v2880_v2 = vsub.f32 1.5, %v2879_v58  ;;  %v2720_v49 = vpop.xlane.xlu0 %2719 }
 0x3a1   : > { %v3873_v23 = vpop.eup %3872  ;;  %v2742_v18 = vmax.f32 %v2720_v49, 1e-24 }
 0x3a2   : > { %v2881_v31 = vmul.f32 %v3871_v44, %v2880_v2  ;;  %v2887_v13 = vmul.f32 %v3873_v23, %v2741_v24  ;;  %vm2893_vm10 = vweird.f32 %v3873_v23 }
 0x3a3   : > { %3874 = vrsqrt.f32 %v2742_v18  ;;  %vm2894_vm12 = vmor %vm2892_vm11, %vm2893_vm10  ;;  %vm2902_vm14 = vweird.f32 %v2742_v18 }
 0x3a4   : > { %v2885_v48 = vsel %vm2884_vm9, %v3871_v44, %v2881_v31  ;;  %v2888_v38 = vmul.f32 %v3873_v23, %v2887_v13 }
 0x3a5   : > { %v2949_v37 = vmul.f32 %v2885_v48, %v4741_v43 }
 0x3a6   : > { %v2889_v35 = vmul.f32 0.5, %v2888_v38 }
 0x3a7   : > { %2968 = vst [vmem:[%s4768_s22 + $0x68] sm:$0xff] %v2949_v37 }
 0x3a8   : > { %v2890_v25 = vsub.f32 1.5, %v2889_v35  ;;  %v2722_v0 = vpop.xlane.xlu1 %2721 }
 0x3a9   : > { %v3875_v39 = vpop.eup %3874  ;;  %v2743_v52 = vmax.f32 %v2722_v0, 1e-24 }
 0x3aa   : > { %v2891_v54 = vmul.f32 %v3873_v23, %v2890_v25  ;;  %v2897_v45 = vmul.f32 %v3875_v39, %v2742_v18  ;;  %vm2903_vm13 = vweird.f32 %v3875_v39 }
 0x3ab   : > { %3876 = vrsqrt.f32 %v2743_v52  ;;  %vm2904_vm15 = vmor %vm2902_vm14, %vm2903_vm13  ;;  %vm2912_vm1 = vweird.f32 %v2743_v52 }
 0x3ac   : > { %v2895_v60 = vsel %vm2894_vm12, %v3873_v23, %v2891_v54  ;;  %v2898_v32 = vmul.f32 %v3875_v39, %v2897_v45 }
 0x3ad   : > { %v2950_v50 = vmul.f32 %v2895_v60, %v4746_v46 }
 0x3ae   : > { %v2899_v57 = vmul.f32 0.5, %v2898_v32 }
 0x3af   : > { %2969 = vst [vmem:[%s4768_s22 + $0x70] sm:$0xff] %v2950_v50 }
 0x3b0   : > { %v2900_v43 = vsub.f32 1.5, %v2899_v57  ;;  %v2724_v34 = vpop.xlane.xlu2 %2723 }
 0x3b1   : > { %v3877_v40 = vpop.eup %3876  ;;  %v2744_v15 = vmax.f32 %v2724_v34, 1e-24 }
 0x3b2   : > { %v2901_v59 = vmul.f32 %v3875_v39, %v2900_v43  ;;  %v2907_v61 = vmul.f32 %v3877_v40, %v2743_v52  ;;  %vm2913_vm0 = vweird.f32 %v3877_v40 }
 0x3b3   : > { %3878 = vrsqrt.f32 %v2744_v15  ;;  %vm2914_vm2 = vmor %vm2912_vm1, %vm2913_vm0  ;;  %vm2922_vm4 = vweird.f32 %v2744_v15 }
 0x3b4   : > { %v2905_v7 = vsel %vm2904_vm15, %v3875_v39, %v2901_v59  ;;  %v2908_v42 = vmul.f32 %v3877_v40, %v2907_v61 }
 0x3b5   : > { %v2951_v5 = vmul.f32 %v2905_v7, %v4751_v14 }
 0x3b6   : > { %v2909_v62 = vmul.f32 0.5, %v2908_v42 }
 0x3b7   : > { %2970 = vst [vmem:[%s4768_s22 + $0x78] sm:$0xff] %v2951_v5 }
 0x3b8   : > { %v2910_v46 = vsub.f32 1.5, %v2909_v62  ;;  %v2726_v63 = vpop.xlane.xlu0 %2725 }
 0x3b9   : > { %v3879_v55 = vpop.eup %3878  ;;  %v2745_v19 = vmax.f32 %v2726_v63, 1e-24 }
 0x3ba   : > { %v2911_v4 = vmul.f32 %v3877_v40, %v2910_v46  ;;  %v2917_v3 = vmul.f32 %v3879_v55, %v2744_v15  ;;  %vm2923_vm3 = vweird.f32 %v3879_v55 }
 0x3bb   : > { %3880 = vrsqrt.f32 %v2745_v19  ;;  %vm2924_vm5 = vmor %vm2922_vm4, %vm2923_vm3  ;;  %vm2932_vm7 = vweird.f32 %v2745_v19 }
 0x3bc   : > { %v2915_v26 = vsel %vm2914_vm2, %v3877_v40, %v2911_v4  ;;  %v2918_v56 = vmul.f32 %v3879_v55, %v2917_v3 }
 0x3bd   : > { %v2952_v6 = vmul.f32 %v2915_v26, %v4756_v33 }
 0x3be   : > { %v2919_v14 = vmul.f32 0.5, %v2918_v56 }
 0x3bf   : > { %2971 = vst [vmem:[%s4768_s22 + $0x80] sm:$0xff] %v2952_v6 }
 0x3c0   : > { %v2920_v47 = vsub.f32 1.5, %v2919_v14 }
 0x3c1   : > { %v3881_v41 = vpop.eup %3880 }
 0x3c2   : > { %v2921_v8 = vmul.f32 %v3879_v55, %v2920_v47  ;;  %v2927_v9 = vmul.f32 %v3881_v41, %v2745_v19  ;;  %vm2933_vm6 = vweird.f32 %v3881_v41 }
 0x3c3   : > { %vm2934_vm8 = vmor %vm2932_vm7, %vm2933_vm6 }
 0x3c4   : > { %v2925_v12 = vsel %vm2924_vm5, %v3879_v55, %v2921_v8  ;;  %v2928_v27 = vmul.f32 %v3881_v41, %v2927_v9 }
 0x3c5   : > { %v2953_v1 = vmul.f32 %v2925_v12, %v4762_v53 }
 0x3c6   : > { %v2929_v22 = vmul.f32 0.5, %v2928_v27 }
 0x3c7   : > { %2972 = vst [vmem:[%s4768_s22 + $0x88] sm:$0xff] %v2953_v1 }
 0x3c8   : > { %v2930_v33 = vsub.f32 1.5, %v2929_v22 }
 0x3ca   : > { %v2931_v30 = vmul.f32 %v3881_v41, %v2930_v33 }
 0x3cc   : > { %v2935_v20 = vsel %vm2934_vm8, %v3881_v41, %v2931_v30 }
 0x3cd   : > { %v2954_v53 = vmul.f32 %v2935_v20, %v4771_v10 }
 0x3cf   : > { %2973 = vst [vmem:[%s4768_s22 + $0x90] sm:$0xff] %v2954_v53 }
 0x3d0   : > { %3999 = shalt.err (!%p3996_p0)
}
 0x3d1   : > { %s4066_s11 = smov 128   ;;  %s4067_s29 = smov 8  }
 0x3d2   : > { %3764 = dma.vmem_to_hbm [thread:$0]  (%p4167_p7), %s2988_s4, 2432, %s2990_s5, %s2975_s15, %s4066_s11, %s4066_s11, %s4067_s29  }
 0x3d3 PF: > { %s3004_s20 = sand.u32 1, %s4038_s12   ;;  %p3778_p3 = pnand %p3098_p11, %p4137_p6 }
 0x3d4   : > { %s3005_s22 = scalar_lea.sflag [#allocation4], %s3004_s20 }
 0x3d5   : > { %p3779_p5 = pneg %p3778_p3 }
 0x3d7   : > { %4033 = dma.done.wait (%p3779_p5), %s3005_s22, 2432  }
 0x3d8   : > { %4035 = vsyncadd (%p3779_p5), %s3005_s22, 4294964864  ;;  %s20_s17 = sadd.s32 1, %s4058_s17   ;;  %s4860_s12 = smov %s4042_s13 }
 0x3d9   : > { %p17_p9 = scmp.ge.s32.totalorder %s20_s17, 4   ;;  %s4861_s13 = smov %s4046_s14 }
 0x3da   : > { %s4862_s14 = smov %s4175_s26  ;;  %s4863_s15 = smov %s4054_s16 }
 0x3db   : > { %s4864_s16 = smov %s4866_s10  ;;  %19 = sbr.rel (!%p17_p9) target bundleno = 7 (0x7), region = 87 }
 0x3e0   :  { %3011 = vsyncpa [#allocation3], 1 }
 0x3e1   :  { %3013 = vsyncpa [#allocation3 + $0x1], 1 }
 0x3e2   :  { %3014 = vsyncpa [#allocation6], 1 }
 0x3e3   :  { %3015 = vsyncpa [#allocation4], 1 }
 0x3e4   :  { %3017 = vsyncpa [#allocation4 + $0x1], 1 }

</bundles_post_ra>
